<compile_context>
chip_gen: v7x
topology: tpu7x:2x2x1
jax: 0.10.0
libtpu: 0.0.40
codegen_flags: <defaults>
</compile_context>

<pallas_src>
import functools

import jax
import jax.numpy as jnp
from jax import lax
from jax.experimental import pallas as pl
from jax.experimental.pallas import tpu as pltpu


def _csdn_kernel(x_ref, top_ref, bot_ref, dw_w_ref, dw_b_ref, pw_w_ref,
                 pw_b_ref, o_ref, dw_acc_ref, *, Ht, W, Cin, Cout, Hh):
    """One (batch, H-tile) grid step.

    x_ref     : (1, Cin, Ht, W)  VMEM  unpadded input tile
    top_ref   : (1, Cin, Hh, W)  VMEM  8-row block whose LAST row is row Ht*h-1
    bot_ref   : (1, Cin, Hh, W)  VMEM  8-row block whose FIRST row is row Ht*(h+1)
    dw_w_ref  : (Cin, 9)         SMEM  depthwise 3x3 weights (row-major taps)
    dw_b_ref  : (1, Cin)         SMEM  depthwise bias
    pw_w_ref  : (Cout, Cin)      SMEM  pointwise 1x1 weights
    pw_b_ref  : (1, Cout)        SMEM  pointwise bias
    o_ref     : (1, Cout, Ht, W) VMEM  output tile
    dw_acc_ref: (Cin, Ht, W)     VMEM  scratch: per-channel depthwise results
    """
    h = pl.program_id(1)
    is_first = h == 0
    is_last = h == pl.num_programs(1) - 1

    # ---- depthwise 3x3 per input channel (VPU; halo handled in-kernel) -----
    for c in range(Cin):
        main = x_ref[0, c].astype(jnp.float32)                       # (Ht, W)

        # Vertical halo rows (zeroed at the image top/bottom == padding=1).
        top_row = jnp.where(is_first, 0.0,
                            top_ref[0, c][Hh - 1:Hh, :].astype(jnp.float32))
        bot_row = jnp.where(is_last, 0.0,
                            bot_ref[0, c][0:1, :].astype(jnp.float32))
        xc = jnp.concatenate([top_row, main, bot_row], axis=0)       # (Ht+2, W)

        # Horizontal halo: build the two lane-shifted copies ONCE per channel
        # (hoisted out of the tap loop -> 2 cross-lane ops instead of 6).
        zcol = jnp.zeros((Ht + 2, 1), jnp.float32)
        x_m1 = jnp.concatenate([zcol, xc[:, :W - 1]], axis=1)        # col w-1
        x_p1 = jnp.concatenate([xc[:, 1:], zcol], axis=1)            # col w+1
        cols = (x_m1, xc, x_p1)

        # 9 shifted FMAs; depthwise bias folded into the accumulator init.
        acc = jnp.full((Ht, W), dw_b_ref[0, c], dtype=jnp.float32)
        for dj in range(3):
            col = cols[dj]
            for di in range(3):
                acc = acc + col[di:di + Ht, :] * dw_w_ref[c, di * 3 + dj]
        dw_acc_ref[c] = acc

    # ---- pointwise 1x1: co-outer / c-inner, one live accumulator -----------
    for co in range(Cout):
        out = jnp.full((Ht, W), pw_b_ref[0, co], dtype=jnp.float32)
        for c in range(Cin):
            out = out + dw_acc_ref[c] * pw_w_ref[co, c]
        o_ref[0, co] = out.astype(o_ref.dtype)


def _vmem_capacity_bytes():
    """Best-effort per-core VMEM capacity; conservative fallback (v7x)."""
    try:
        info = pltpu.get_tpu_info()
        for attr in ("vmem_capacity_bytes", "vmem_bytes", "vmem_size_bytes"):
            cap = getattr(info, attr, None)
            if cap:
                return int(cap)
    except Exception:
        pass
    return 64 << 20


def _choose_h_tile(N, H, W, Cin, Cout, budget_bytes):
    """Largest multiple-of-8 divisor of H whose tile footprint fits the budget."""
    # Rough f32 VMEM footprint per output row: double-buffered main input and
    # output blocks, Cin depthwise-scratch rows, ~8 rows of in-flight temps.
    per_row = 4 * W * (2 * Cin + 2 * Cout + Cin + 8)
    cands = [ht for ht in range(8, H, 8) if H % ht == 0]
    if H * per_row <= budget_bytes:
        if N >= 2 or not cands:
            return H
        # N == 1: split H anyway so both TensorCores (v7x megacore) get work.
        halves = [ht for ht in cands if ht <= (H + 1) // 2]
        return max(halves) if halves else H
    fitting = [ht for ht in cands if ht * per_row <= budget_bytes]
    if fitting:
        return max(fitting)
    if cands:
        return min(cands)
    # No clean multiple-of-8 divisor: fall back to whole-image blocks.
    return H


def csdn_forward(x_nchw, dw_w, dw_b, pw_w, pw_b):
    """Forward pass of CSDN_Tem (NCHW in, NCHW out, no transposes / no pad).

    x_nchw : (N, Cin, H, W)     float32
    dw_w   : (Cin, 1, 3, 3)     depthwise conv weight (groups=Cin)
    dw_b   : (Cin,)             depthwise conv bias
    pw_w   : (Cout, Cin, 1, 1)  pointwise conv weight
    pw_b   : (Cout,)            pointwise conv bias
    returns: (N, Cout, H, W)
    """
    N, Cin, H, W = x_nchw.shape
    Cout = pw_w.shape[0]

    cap = _vmem_capacity_bytes()
    Ht = _choose_h_tile(N, H, W, Cin, Cout, budget_bytes=(2 * cap) // 5)
    assert H % Ht == 0
    nh = H // Ht
    # Halo block height: 8 rows keeps the (8,128) block rule without needing a
    # second-minor block dim of 1; the kernel picks the single row it needs.
    Hh = 8 if H >= 8 else H
    hb_per_tile = max(Ht // Hh, 1)
    last_halo_blk = max((H - Hh) // Hh, 0)

    dw_w_flat = dw_w.reshape(Cin, 9)          # (Cin, 9)   taps row-major
    dw_b_2d = dw_b.reshape(1, Cin)            # (1, Cin)
    pw_w_2d = pw_w.reshape(Cout, Cin)         # (Cout, Cin)
    pw_b_2d = pw_b.reshape(1, Cout)           # (1, Cout)

    kernel = functools.partial(_csdn_kernel, Ht=Ht, W=W, Cin=Cin, Cout=Cout,
                               Hh=Hh)

    def main_map(n, h):
        return (n, 0, h, 0)

    def top_map(n, h):
        # 8-row block ending at global row h*Ht - 1 (clamped; masked at h==0).
        return (n, 0, jnp.maximum(h * hb_per_tile - 1, 0), 0)

    def bot_map(n, h):
        # 8-row block starting at global row (h+1)*Ht (clamped; masked at end).
        return (n, 0, jnp.minimum((h + 1) * hb_per_tile, last_halo_blk), 0)

    # ~75% of physical VMEM: 48 MiB on v7x (64 MiB), 96 MiB on v5e/v6e (128 MiB).
    vmem_limit = int(max(32 << 20, (3 * cap) // 4))

    out = pl.pallas_call(
        kernel,
        out_shape=jax.ShapeDtypeStruct((N, Cout, H, W), x_nchw.dtype),
        grid_spec=pltpu.PrefetchScalarGridSpec(
            num_scalar_prefetch=0,
            grid=(N, nh),
            in_specs=[
                pl.BlockSpec((1, Cin, Ht, W), main_map),
                pl.BlockSpec((1, Cin, Hh, W), top_map),
                pl.BlockSpec((1, Cin, Hh, W), bot_map),
                pl.BlockSpec(memory_space=pltpu.MemorySpace.SMEM),
                pl.BlockSpec(memory_space=pltpu.MemorySpace.SMEM),
                pl.BlockSpec(memory_space=pltpu.MemorySpace.SMEM),
                pl.BlockSpec(memory_space=pltpu.MemorySpace.SMEM),
            ],
            out_specs=pl.BlockSpec((1, Cout, Ht, W), main_map),
            scratch_shapes=[pltpu.VMEM((Cin, Ht, W), jnp.float32)],
        ),
        compiler_params=pltpu.CompilerParams(
            dimension_semantics=("parallel", "parallel"),
            vmem_limit_bytes=vmem_limit,
        ),
    )(x_nchw, x_nchw, x_nchw, dw_w_flat, dw_b_2d, pw_w_2d, pw_b_2d)

    return out


def _reference_forward(x, dw_w, dw_b, pw_w, pw_b):
    """Pure-JAX reference (lax conv), NCHW semantics identical to PyTorch."""
    Cin = x.shape[1]
    dn = lax.conv_dimension_numbers(x.shape, dw_w.shape, ("NCHW", "OIHW", "NCHW"))
    out = lax.conv_general_dilated(
        x, dw_w, window_strides=(1, 1), padding=((1, 1), (1, 1)),
        dimension_numbers=dn, feature_group_count=Cin)
    out = out + dw_b.reshape(1, -1, 1, 1)
    dn2 = lax.conv_dimension_numbers(out.shape, pw_w.shape, ("NCHW", "OIHW", "NCHW"))
    out = lax.conv_general_dilated(
        out, pw_w, window_strides=(1, 1), padding=((0, 0), (0, 0)),
        dimension_numbers=dn2)
    out = out + pw_b.reshape(1, -1, 1, 1)
    return out


if __name__ == "__main__":
    # Small deterministic setup consistent with CSDN_Tem(in_ch=4, out_ch=8)
    N, Cin, Cout, H, W = 2, 4, 8, 16, 16

    key = jax.random.PRNGKey(0)
    k_x, k_dw, k_db, k_pw, k_pb = jax.random.split(key, 5)

    x = jax.random.normal(k_x, (N, Cin, H, W), dtype=jnp.float32)

    # Deterministic synthetic parameters (shapes match nn.Conv2d in __init__).
    fan_dw = (Cin // Cin) * 3 * 3          # = 9 (groups=Cin -> in_ch/groups = 1)
    bound_dw = 1.0 / (fan_dw ** 0.5)
    dw_w = jax.random.uniform(k_dw, (Cin, 1, 3, 3), jnp.float32, -bound_dw, bound_dw)
    dw_b = jax.random.uniform(k_db, (Cin,), jnp.float32, -bound_dw, bound_dw)

    fan_pw = Cin * 1 * 1
    bound_pw = 1.0 / (fan_pw ** 0.5)
    pw_w = jax.random.uniform(k_pw, (Cout, Cin, 1, 1), jnp.float32, -bound_pw, bound_pw)
    pw_b = jax.random.uniform(k_pb, (Cout,), jnp.float32, -bound_pw, bound_pw)

    out = jax.block_until_ready(csdn_forward(x, dw_w, dw_b, pw_w, pw_b))

    ref = jax.block_until_ready(_reference_forward(x, dw_w, dw_b, pw_w, pw_b))
    assert out.shape == (N, Cout, H, W), out.shape
    assert jnp.allclose(out, ref, atol=1e-4, rtol=1e-4), float(jnp.max(jnp.abs(out - ref)))

    print("KERNEL_OK")
</pallas_src>

<mosaic_0001>
module attributes {stable_mosaic.version = 11 : i64} {
  func.func @_csdn_kernel(%arg0: i32, %arg1: i32, %arg2: memref<1x4x16x16xf32, #tpu.memory_space<vmem>>, %arg3: memref<1x4x8x16xf32, #tpu.memory_space<vmem>>, %arg4: memref<1x4x8x16xf32, #tpu.memory_space<vmem>>, %arg5: memref<4x9xf32, #tpu.memory_space<smem>>, %arg6: memref<1x4xf32, #tpu.memory_space<smem>>, %arg7: memref<8x4xf32, #tpu.memory_space<smem>>, %arg8: memref<1x8xf32, #tpu.memory_space<smem>>, %arg9: memref<1x8x16x16xf32, #tpu.memory_space<vmem>>, %arg10: memref<4x16x16xf32, #tpu.memory_space<vmem>>) attributes {dimension_semantics = [#tpu.dimension_semantics<parallel>, #tpu.dimension_semantics<parallel>], iteration_bounds = array<i64: 2, 1>, scalar_prefetch = 0 : i64, scratch_operands = 1 : i64, tpu.core_type = #tpu.core_type<tc>, window_params = [{transform_indices = @transform_0, window_bounds = array<i64: 1, 4, 16, 16>}, {transform_indices = @transform_1, window_bounds = array<i64: 1, 4, 8, 16>}, {transform_indices = @transform_2, window_bounds = array<i64: 1, 4, 8, 16>}, {transform_indices = @transform_3, window_bounds = array<i64: 4, 9>}, {transform_indices = @transform_4, window_bounds = array<i64: 1, 4>}, {transform_indices = @transform_5, window_bounds = array<i64: 8, 4>}, {transform_indices = @transform_6, window_bounds = array<i64: 1, 8>}, {transform_indices = @transform_7, window_bounds = array<i64: 1, 8, 16, 16>}]} {
    %c0_i32 = arith.constant 0 : i32
    %0 = arith.cmpi eq, %arg1, %c0_i32 : i32
    %c0_i32_0 = arith.constant 0 : i32
    %1 = arith.cmpi eq, %arg1, %c0_i32_0 : i32
    %c0 = arith.constant 0 : index
    %c0_1 = arith.constant 0 : index
    %c0_2 = arith.constant 0 : index
    %c0_3 = arith.constant 0 : index
    %2 = vector.load %arg2[%c0, %c0_1, %c0_2, %c0_3] : memref<1x4x16x16xf32, #tpu.memory_space<vmem>>, vector<1x1x16x16xf32>
    %3 = vector.shape_cast %2 : vector<1x1x16x16xf32> to vector<16x16xf32>
    %c0_4 = arith.constant 0 : index
    %c0_5 = arith.constant 0 : index
    %c0_6 = arith.constant 0 : index
    %c0_7 = arith.constant 0 : index
    %4 = vector.load %arg3[%c0_4, %c0_5, %c0_6, %c0_7] : memref<1x4x8x16xf32, #tpu.memory_space<vmem>>, vector<1x1x8x16xf32>
    %5 = vector.shape_cast %4 : vector<1x1x8x16xf32> to vector<8x16xf32>
    %6 = vector.extract_strided_slice %5 {offsets = [7, 0], sizes = [1, 16], strides = [1, 1]} : vector<8x16xf32> to vector<1x16xf32>
    %cst = arith.constant 0.000000e+00 : f32
    %7 = vector.broadcast %cst : f32 to vector<1x16xf32>
    %8 = arith.select %0, %7, %6 : vector<1x16xf32>
    %c0_8 = arith.constant 0 : index
    %c0_9 = arith.constant 0 : index
    %c0_10 = arith.constant 0 : index
    %c0_11 = arith.constant 0 : index
    %9 = vector.load %arg4[%c0_8, %c0_9, %c0_10, %c0_11] : memref<1x4x8x16xf32, #tpu.memory_space<vmem>>, vector<1x1x8x16xf32>
    %10 = vector.shape_cast %9 : vector<1x1x8x16xf32> to vector<8x16xf32>
    %11 = vector.extract_strided_slice %10 {offsets = [0, 0], sizes = [1, 16], strides = [1, 1]} : vector<8x16xf32> to vector<1x16xf32>
    %cst_12 = arith.constant 0.000000e+00 : f32
    %12 = vector.broadcast %cst_12 : f32 to vector<1x16xf32>
    %13 = arith.select %1, %12, %11 : vector<1x16xf32>
    %14 = tpu.concatenate %8, %3, %13 in 0 : vector<1x16xf32>, vector<16x16xf32>, vector<1x16xf32> -> vector<18x16xf32>
    %cst_13 = arith.constant 0.000000e+00 : f32
    %15 = vector.broadcast %cst_13 : f32 to vector<18x1xf32>
    %16 = vector.extract_strided_slice %14 {offsets = [0, 0], sizes = [18, 15], strides = [1, 1]} : vector<18x16xf32> to vector<18x15xf32>
    %17 = tpu.concatenate %15, %16 in 1 : vector<18x1xf32>, vector<18x15xf32> -> vector<18x16xf32>
    %18 = vector.extract_strided_slice %14 {offsets = [0, 1], sizes = [18, 15], strides = [1, 1]} : vector<18x16xf32> to vector<18x15xf32>
    %19 = tpu.concatenate %18, %15 in 1 : vector<18x15xf32>, vector<18x1xf32> -> vector<18x16xf32>
    %c0_14 = arith.constant 0 : index
    %c0_15 = arith.constant 0 : index
    %20 = memref.load %arg6[%c0_14, %c0_15] : memref<1x4xf32, #tpu.memory_space<smem>>
    %21 = vector.broadcast %20 : f32 to vector<16x16xf32>
    %22 = vector.extract_strided_slice %17 {offsets = [0, 0], sizes = [16, 16], strides = [1, 1]} : vector<18x16xf32> to vector<16x16xf32>
    %c0_16 = arith.constant 0 : index
    %c0_17 = arith.constant 0 : index
    %23 = memref.load %arg5[%c0_16, %c0_17] : memref<4x9xf32, #tpu.memory_space<smem>>
    %24 = vector.broadcast %23 : f32 to vector<16x16xf32>
    %25 = arith.mulf %22, %24 : vector<16x16xf32>
    %26 = arith.addf %21, %25 : vector<16x16xf32>
    %27 = vector.extract_strided_slice %17 {offsets = [1, 0], sizes = [16, 16], strides = [1, 1]} : vector<18x16xf32> to vector<16x16xf32>
    %c0_18 = arith.constant 0 : index
    %c3 = arith.constant 3 : index
    %28 = memref.load %arg5[%c0_18, %c3] : memref<4x9xf32, #tpu.memory_space<smem>>
    %29 = vector.broadcast %28 : f32 to vector<16x16xf32>
    %30 = arith.mulf %27, %29 : vector<16x16xf32>
    %31 = arith.addf %26, %30 : vector<16x16xf32>
    %32 = vector.extract_strided_slice %17 {offsets = [2, 0], sizes = [16, 16], strides = [1, 1]} : vector<18x16xf32> to vector<16x16xf32>
    %c0_19 = arith.constant 0 : index
    %c6 = arith.constant 6 : index
    %33 = memref.load %arg5[%c0_19, %c6] : memref<4x9xf32, #tpu.memory_space<smem>>
    %34 = vector.broadcast %33 : f32 to vector<16x16xf32>
    %35 = arith.mulf %32, %34 : vector<16x16xf32>
    %36 = arith.addf %31, %35 : vector<16x16xf32>
    %37 = vector.extract_strided_slice %14 {offsets = [0, 0], sizes = [16, 16], strides = [1, 1]} : vector<18x16xf32> to vector<16x16xf32>
    %c0_20 = arith.constant 0 : index
    %c1 = arith.constant 1 : index
    %38 = memref.load %arg5[%c0_20, %c1] : memref<4x9xf32, #tpu.memory_space<smem>>
    %39 = vector.broadcast %38 : f32 to vector<16x16xf32>
    %40 = arith.mulf %37, %39 : vector<16x16xf32>
    %41 = arith.addf %36, %40 : vector<16x16xf32>
    %42 = vector.extract_strided_slice %14 {offsets = [1, 0], sizes = [16, 16], strides = [1, 1]} : vector<18x16xf32> to vector<16x16xf32>
    %c0_21 = arith.constant 0 : index
    %c4 = arith.constant 4 : index
    %43 = memref.load %arg5[%c0_21, %c4] : memref<4x9xf32, #tpu.memory_space<smem>>
    %44 = vector.broadcast %43 : f32 to vector<16x16xf32>
    %45 = arith.mulf %42, %44 : vector<16x16xf32>
    %46 = arith.addf %41, %45 : vector<16x16xf32>
    %47 = vector.extract_strided_slice %14 {offsets = [2, 0], sizes = [16, 16], strides = [1, 1]} : vector<18x16xf32> to vector<16x16xf32>
    %c0_22 = arith.constant 0 : index
    %c7 = arith.constant 7 : index
    %48 = memref.load %arg5[%c0_22, %c7] : memref<4x9xf32, #tpu.memory_space<smem>>
    %49 = vector.broadcast %48 : f32 to vector<16x16xf32>
    %50 = arith.mulf %47, %49 : vector<16x16xf32>
    %51 = arith.addf %46, %50 : vector<16x16xf32>
    %52 = vector.extract_strided_slice %19 {offsets = [0, 0], sizes = [16, 16], strides = [1, 1]} : vector<18x16xf32> to vector<16x16xf32>
    %c0_23 = arith.constant 0 : index
    %c2 = arith.constant 2 : index
    %53 = memref.load %arg5[%c0_23, %c2] : memref<4x9xf32, #tpu.memory_space<smem>>
    %54 = vector.broadcast %53 : f32 to vector<16x16xf32>
    %55 = arith.mulf %52, %54 : vector<16x16xf32>
    %56 = arith.addf %51, %55 : vector<16x16xf32>
    %57 = vector.extract_strided_slice %19 {offsets = [1, 0], sizes = [16, 16], strides = [1, 1]} : vector<18x16xf32> to vector<16x16xf32>
    %c0_24 = arith.constant 0 : index
    %c5 = arith.constant 5 : index
    %58 = memref.load %arg5[%c0_24, %c5] : memref<4x9xf32, #tpu.memory_space<smem>>
    %59 = vector.broadcast %58 : f32 to vector<16x16xf32>
    %60 = arith.mulf %57, %59 : vector<16x16xf32>
    %61 = arith.addf %56, %60 : vector<16x16xf32>
    %62 = vector.extract_strided_slice %19 {offsets = [2, 0], sizes = [16, 16], strides = [1, 1]} : vector<18x16xf32> to vector<16x16xf32>
    %c0_25 = arith.constant 0 : index
    %c8 = arith.constant 8 : index
    %63 = memref.load %arg5[%c0_25, %c8] : memref<4x9xf32, #tpu.memory_space<smem>>
    %64 = vector.broadcast %63 : f32 to vector<16x16xf32>
    %65 = arith.mulf %62, %64 : vector<16x16xf32>
    %66 = arith.addf %61, %65 : vector<16x16xf32>
    %c0_26 = arith.constant 0 : index
    %c0_27 = arith.constant 0 : index
    %c0_28 = arith.constant 0 : index
    %67 = vector.load %arg10[%c0_26, %c0_27, %c0_28] : memref<4x16x16xf32, #tpu.memory_space<vmem>>, vector<1x16x16xf32>
    %68 = vector.shape_cast %67 : vector<1x16x16xf32> to vector<16x16xf32>
    %69 = vector.shape_cast %66 : vector<16x16xf32> to vector<1x16x16xf32>
    tpu.vector_store %arg10[%c0_26, %c0_27, %c0_28], %69 {strides = array<i32>} : memref<4x16x16xf32, #tpu.memory_space<vmem>>, vector<1x16x16xf32>,
    %c0_29 = arith.constant 0 : index
    %c1_30 = arith.constant 1 : index
    %c0_31 = arith.constant 0 : index
    %c0_32 = arith.constant 0 : index
    %70 = vector.load %arg2[%c0_29, %c1_30, %c0_31, %c0_32] : memref<1x4x16x16xf32, #tpu.memory_space<vmem>>, vector<1x1x16x16xf32>
    %71 = vector.shape_cast %70 : vector<1x1x16x16xf32> to vector<16x16xf32>
    %c0_33 = arith.constant 0 : index
    %c1_34 = arith.constant 1 : index
    %c0_35 = arith.constant 0 : index
    %c0_36 = arith.constant 0 : index
    %72 = vector.load %arg3[%c0_33, %c1_34, %c0_35, %c0_36] : memref<1x4x8x16xf32, #tpu.memory_space<vmem>>, vector<1x1x8x16xf32>
    %73 = vector.shape_cast %72 : vector<1x1x8x16xf32> to vector<8x16xf32>
    %74 = vector.extract_strided_slice %73 {offsets = [7, 0], sizes = [1, 16], strides = [1, 1]} : vector<8x16xf32> to vector<1x16xf32>
    %cst_37 = arith.constant 0.000000e+00 : f32
    %75 = vector.broadcast %cst_37 : f32 to vector<1x16xf32>
    %76 = arith.select %0, %75, %74 : vector<1x16xf32>
    %c0_38 = arith.constant 0 : index
    %c1_39 = arith.constant 1 : index
    %c0_40 = arith.constant 0 : index
    %c0_41 = arith.constant 0 : index
    %77 = vector.load %arg4[%c0_38, %c1_39, %c0_40, %c0_41] : memref<1x4x8x16xf32, #tpu.memory_space<vmem>>, vector<1x1x8x16xf32>
    %78 = vector.shape_cast %77 : vector<1x1x8x16xf32> to vector<8x16xf32>
    %79 = vector.extract_strided_slice %78 {offsets = [0, 0], sizes = [1, 16], strides = [1, 1]} : vector<8x16xf32> to vector<1x16xf32>
    %cst_42 = arith.constant 0.000000e+00 : f32
    %80 = vector.broadcast %cst_42 : f32 to vector<1x16xf32>
    %81 = arith.select %1, %80, %79 : vector<1x16xf32>
    %82 = tpu.concatenate %76, %71, %81 in 0 : vector<1x16xf32>, vector<16x16xf32>, vector<1x16xf32> -> vector<18x16xf32>
    %cst_43 = arith.constant 0.000000e+00 : f32
    %83 = vector.broadcast %cst_43 : f32 to vector<18x1xf32>
    %84 = vector.extract_strided_slice %82 {offsets = [0, 0], sizes = [18, 15], strides = [1, 1]} : vector<18x16xf32> to vector<18x15xf32>
    %85 = tpu.concatenate %83, %84 in 1 : vector<18x1xf32>, vector<18x15xf32> -> vector<18x16xf32>
    %86 = vector.extract_strided_slice %82 {offsets = [0, 1], sizes = [18, 15], strides = [1, 1]} : vector<18x16xf32> to vector<18x15xf32>
    %87 = tpu.concatenate %86, %83 in 1 : vector<18x15xf32>, vector<18x1xf32> -> vector<18x16xf32>
    %c0_44 = arith.constant 0 : index
    %c1_45 = arith.constant 1 : index
    %88 = memref.load %arg6[%c0_44, %c1_45] : memref<1x4xf32, #tpu.memory_space<smem>>
    %89 = vector.broadcast %88 : f32 to vector<16x16xf32>
    %90 = vector.extract_strided_slice %85 {offsets = [0, 0], sizes = [16, 16], strides = [1, 1]} : vector<18x16xf32> to vector<16x16xf32>
    %c1_46 = arith.constant 1 : index
    %c0_47 = arith.constant 0 : index
    %91 = memref.load %arg5[%c1_46, %c0_47] : memref<4x9xf32, #tpu.memory_space<smem>>
    %92 = vector.broadcast %91 : f32 to vector<16x16xf32>
    %93 = arith.mulf %90, %92 : vector<16x16xf32>
    %94 = arith.addf %89, %93 : vector<16x16xf32>
    %95 = vector.extract_strided_slice %85 {offsets = [1, 0], sizes = [16, 16], strides = [1, 1]} : vector<18x16xf32> to vector<16x16xf32>
    %c1_48 = arith.constant 1 : index
    %c3_49 = arith.constant 3 : index
    %96 = memref.load %arg5[%c1_48, %c3_49] : memref<4x9xf32, #tpu.memory_space<smem>>
    %97 = vector.broadcast %96 : f32 to vector<16x16xf32>
    %98 = arith.mulf %95, %97 : vector<16x16xf32>
    %99 = arith.addf %94, %98 : vector<16x16xf32>
    %100 = vector.extract_strided_slice %85 {offsets = [2, 0], sizes = [16, 16], strides = [1, 1]} : vector<18x16xf32> to vector<16x16xf32>
    %c1_50 = arith.constant 1 : index
    %c6_51 = arith.constant 6 : index
    %101 = memref.load %arg5[%c1_50, %c6_51] : memref<4x9xf32, #tpu.memory_space<smem>>
    %102 = vector.broadcast %101 : f32 to vector<16x16xf32>
    %103 = arith.mulf %100, %102 : vector<16x16xf32>
    %104 = arith.addf %99, %103 : vector<16x16xf32>
    %105 = vector.extract_strided_slice %82 {offsets = [0, 0], sizes = [16, 16], strides = [1, 1]} : vector<18x16xf32> to vector<16x16xf32>
    %c1_52 = arith.constant 1 : index
    %c1_53 = arith.constant 1 : index
    %106 = memref.load %arg5[%c1_52, %c1_53] : memref<4x9xf32, #tpu.memory_space<smem>>
    %107 = vector.broadcast %106 : f32 to vector<16x16xf32>
    %108 = arith.mulf %105, %107 : vector<16x16xf32>
    %109 = arith.addf %104, %108 : vector<16x16xf32>
    %110 = vector.extract_strided_slice %82 {offsets = [1, 0], sizes = [16, 16], strides = [1, 1]} : vector<18x16xf32> to vector<16x16xf32>
    %c1_54 = arith.constant 1 : index
    %c4_55 = arith.constant 4 : index
    %111 = memref.load %arg5[%c1_54, %c4_55] : memref<4x9xf32, #tpu.memory_space<smem>>
    %112 = vector.broadcast %111 : f32 to vector<16x16xf32>
    %113 = arith.mulf %110, %112 : vector<16x16xf32>
    %114 = arith.addf %109, %113 : vector<16x16xf32>
    %115 = vector.extract_strided_slice %82 {offsets = [2, 0], sizes = [16, 16], strides = [1, 1]} : vector<18x16xf32> to vector<16x16xf32>
    %c1_56 = arith.constant 1 : index
    %c7_57 = arith.constant 7 : index
    %116 = memref.load %arg5[%c1_56, %c7_57] : memref<4x9xf32, #tpu.memory_space<smem>>
    %117 = vector.broadcast %116 : f32 to vector<16x16xf32>
    %118 = arith.mulf %115, %117 : vector<16x16xf32>
    %119 = arith.addf %114, %118 : vector<16x16xf32>
    %120 = vector.extract_strided_slice %87 {offsets = [0, 0], sizes = [16, 16], strides = [1, 1]} : vector<18x16xf32> to vector<16x16xf32>
    %c1_58 = arith.constant 1 : index
    %c2_59 = arith.constant 2 : index
    %121 = memref.load %arg5[%c1_58, %c2_59] : memref<4x9xf32, #tpu.memory_space<smem>>
    %122 = vector.broadcast %121 : f32 to vector<16x16xf32>
    %123 = arith.mulf %120, %122 : vector<16x16xf32>
    %124 = arith.addf %119, %123 : vector<16x16xf32>
    %125 = vector.extract_strided_slice %87 {offsets = [1, 0], sizes = [16, 16], strides = [1, 1]} : vector<18x16xf32> to vector<16x16xf32>
    %c1_60 = arith.constant 1 : index
    %c5_61 = arith.constant 5 : index
    %126 = memref.load %arg5[%c1_60, %c5_61] : memref<4x9xf32, #tpu.memory_space<smem>>
    %127 = vector.broadcast %126 : f32 to vector<16x16xf32>
    %128 = arith.mulf %125, %127 : vector<16x16xf32>
    %129 = arith.addf %124, %128 : vector<16x16xf32>
    %130 = vector.extract_strided_slice %87 {offsets = [2, 0], sizes = [16, 16], strides = [1, 1]} : vector<18x16xf32> to vector<16x16xf32>
    %c1_62 = arith.constant 1 : index
    %c8_63 = arith.constant 8 : index
    %131 = memref.load %arg5[%c1_62, %c8_63] : memref<4x9xf32, #tpu.memory_space<smem>>
    %132 = vector.broadcast %131 : f32 to vector<16x16xf32>
    %133 = arith.mulf %130, %132 : vector<16x16xf32>
    %134 = arith.addf %129, %133 : vector<16x16xf32>
    %c1_64 = arith.constant 1 : index
    %c0_65 = arith.constant 0 : index
    %c0_66 = arith.constant 0 : index
    %135 = vector.load %arg10[%c1_64, %c0_65, %c0_66] : memref<4x16x16xf32, #tpu.memory_space<vmem>>, vector<1x16x16xf32>
    %136 = vector.shape_cast %135 : vector<1x16x16xf32> to vector<16x16xf32>
    %137 = vector.shape_cast %134 : vector<16x16xf32> to vector<1x16x16xf32>
    tpu.vector_store %arg10[%c1_64, %c0_65, %c0_66], %137 {strides = array<i32>} : memref<4x16x16xf32, #tpu.memory_space<vmem>>, vector<1x16x16xf32>,
    %c0_67 = arith.constant 0 : index
    %c2_68 = arith.constant 2 : index
    %c0_69 = arith.constant 0 : index
    %c0_70 = arith.constant 0 : index
    %138 = vector.load %arg2[%c0_67, %c2_68, %c0_69, %c0_70] : memref<1x4x16x16xf32, #tpu.memory_space<vmem>>, vector<1x1x16x16xf32>
    %139 = vector.shape_cast %138 : vector<1x1x16x16xf32> to vector<16x16xf32>
    %c0_71 = arith.constant 0 : index
    %c2_72 = arith.constant 2 : index
    %c0_73 = arith.constant 0 : index
    %c0_74 = arith.constant 0 : index
    %140 = vector.load %arg3[%c0_71, %c2_72, %c0_73, %c0_74] : memref<1x4x8x16xf32, #tpu.memory_space<vmem>>, vector<1x1x8x16xf32>
    %141 = vector.shape_cast %140 : vector<1x1x8x16xf32> to vector<8x16xf32>
    %142 = vector.extract_strided_slice %141 {offsets = [7, 0], sizes = [1, 16], strides = [1, 1]} : vector<8x16xf32> to vector<1x16xf32>
    %cst_75 = arith.constant 0.000000e+00 : f32
    %143 = vector.broadcast %cst_75 : f32 to vector<1x16xf32>
    %144 = arith.select %0, %143, %142 : vector<1x16xf32>
    %c0_76 = arith.constant 0 : index
    %c2_77 = arith.constant 2 : index
    %c0_78 = arith.constant 0 : index
    %c0_79 = arith.constant 0 : index
    %145 = vector.load %arg4[%c0_76, %c2_77, %c0_78, %c0_79] : memref<1x4x8x16xf32, #tpu.memory_space<vmem>>, vector<1x1x8x16xf32>
    %146 = vector.shape_cast %145 : vector<1x1x8x16xf32> to vector<8x16xf32>
    %147 = vector.extract_strided_slice %146 {offsets = [0, 0], sizes = [1, 16], strides = [1, 1]} : vector<8x16xf32> to vector<1x16xf32>
    %cst_80 = arith.constant 0.000000e+00 : f32
    %148 = vector.broadcast %cst_80 : f32 to vector<1x16xf32>
    %149 = arith.select %1, %148, %147 : vector<1x16xf32>
    %150 = tpu.concatenate %144, %139, %149 in 0 : vector<1x16xf32>, vector<16x16xf32>, vector<1x16xf32> -> vector<18x16xf32>
    %cst_81 = arith.constant 0.000000e+00 : f32
    %151 = vector.broadcast %cst_81 : f32 to vector<18x1xf32>
    %152 = vector.extract_strided_slice %150 {offsets = [0, 0], sizes = [18, 15], strides = [1, 1]} : vector<18x16xf32> to vector<18x15xf32>
    %153 = tpu.concatenate %151, %152 in 1 : vector<18x1xf32>, vector<18x15xf32> -> vector<18x16xf32>
    %154 = vector.extract_strided_slice %150 {offsets = [0, 1], sizes = [18, 15], strides = [1, 1]} : vector<18x16xf32> to vector<18x15xf32>
    %155 = tpu.concatenate %154, %151 in 1 : vector<18x15xf32>, vector<18x1xf32> -> vector<18x16xf32>
    %c0_82 = arith.constant 0 : index
    %c2_83 = arith.constant 2 : index
    %156 = memref.load %arg6[%c0_82, %c2_83] : memref<1x4xf32, #tpu.memory_space<smem>>
    %157 = vector.broadcast %156 : f32 to vector<16x16xf32>
    %158 = vector.extract_strided_slice %153 {offsets = [0, 0], sizes = [16, 16], strides = [1, 1]} : vector<18x16xf32> to vector<16x16xf32>
    %c2_84 = arith.constant 2 : index
    %c0_85 = arith.constant 0 : index
    %159 = memref.load %arg5[%c2_84, %c0_85] : memref<4x9xf32, #tpu.memory_space<smem>>
    %160 = vector.broadcast %159 : f32 to vector<16x16xf32>
    %161 = arith.mulf %158, %160 : vector<16x16xf32>
    %162 = arith.addf %157, %161 : vector<16x16xf32>
    %163 = vector.extract_strided_slice %153 {offsets = [1, 0], sizes = [16, 16], strides = [1, 1]} : vector<18x16xf32> to vector<16x16xf32>
    %c2_86 = arith.constant 2 : index
    %c3_87 = arith.constant 3 : index
    %164 = memref.load %arg5[%c2_86, %c3_87] : memref<4x9xf32, #tpu.memory_space<smem>>
    %165 = vector.broadcast %164 : f32 to vector<16x16xf32>
    %166 = arith.mulf %163, %165 : vector<16x16xf32>
    %167 = arith.addf %162, %166 : vector<16x16xf32>
    %168 = vector.extract_strided_slice %153 {offsets = [2, 0], sizes = [16, 16], strides = [1, 1]} : vector<18x16xf32> to vector<16x16xf32>
    %c2_88 = arith.constant 2 : index
    %c6_89 = arith.constant 6 : index
    %169 = memref.load %arg5[%c2_88, %c6_89] : memref<4x9xf32, #tpu.memory_space<smem>>
    %170 = vector.broadcast %169 : f32 to vector<16x16xf32>
    %171 = arith.mulf %168, %170 : vector<16x16xf32>
    %172 = arith.addf %167, %171 : vector<16x16xf32>
    %173 = vector.extract_strided_slice %150 {offsets = [0, 0], sizes = [16, 16], strides = [1, 1]} : vector<18x16xf32> to vector<16x16xf32>
    %c2_90 = arith.constant 2 : index
    %c1_91 = arith.constant 1 : index
    %174 = memref.load %arg5[%c2_90, %c1_91] : memref<4x9xf32, #tpu.memory_space<smem>>
    %175 = vector.broadcast %174 : f32 to vector<16x16xf32>
    %176 = arith.mulf %173, %175 : vector<16x16xf32>
    %177 = arith.addf %172, %176 : vector<16x16xf32>
    %178 = vector.extract_strided_slice %150 {offsets = [1, 0], sizes = [16, 16], strides = [1, 1]} : vector<18x16xf32> to vector<16x16xf32>
    %c2_92 = arith.constant 2 : index
    %c4_93 = arith.constant 4 : index
    %179 = memref.load %arg5[%c2_92, %c4_93] : memref<4x9xf32, #tpu.memory_space<smem>>
    %180 = vector.broadcast %179 : f32 to vector<16x16xf32>
    %181 = arith.mulf %178, %180 : vector<16x16xf32>
    %182 = arith.addf %177, %181 : vector<16x16xf32>
    %183 = vector.extract_strided_slice %150 {offsets = [2, 0], sizes = [16, 16], strides = [1, 1]} : vector<18x16xf32> to vector<16x16xf32>
    %c2_94 = arith.constant 2 : index
    %c7_95 = arith.constant 7 : index
    %184 = memref.load %arg5[%c2_94, %c7_95] : memref<4x9xf32, #tpu.memory_space<smem>>
    %185 = vector.broadcast %184 : f32 to vector<16x16xf32>
    %186 = arith.mulf %183, %185 : vector<16x16xf32>
    %187 = arith.addf %182, %186 : vector<16x16xf32>
    %188 = vector.extract_strided_slice %155 {offsets = [0, 0], sizes = [16, 16], strides = [1, 1]} : vector<18x16xf32> to vector<16x16xf32>
    %c2_96 = arith.constant 2 : index
    %c2_97 = arith.constant 2 : index
    %189 = memref.load %arg5[%c2_96, %c2_97] : memref<4x9xf32, #tpu.memory_space<smem>>
    %190 = vector.broadcast %189 : f32 to vector<16x16xf32>
    %191 = arith.mulf %188, %190 : vector<16x16xf32>
    %192 = arith.addf %187, %191 : vector<16x16xf32>
    %193 = vector.extract_strided_slice %155 {offsets = [1, 0], sizes = [16, 16], strides = [1, 1]} : vector<18x16xf32> to vector<16x16xf32>
    %c2_98 = arith.constant 2 : index
    %c5_99 = arith.constant 5 : index
    %194 = memref.load %arg5[%c2_98, %c5_99] : memref<4x9xf32, #tpu.memory_space<smem>>
    %195 = vector.broadcast %194 : f32 to vector<16x16xf32>
    %196 = arith.mulf %193, %195 : vector<16x16xf32>
    %197 = arith.addf %192, %196 : vector<16x16xf32>
    %198 = vector.extract_strided_slice %155 {offsets = [2, 0], sizes = [16, 16], strides = [1, 1]} : vector<18x16xf32> to vector<16x16xf32>
    %c2_100 = arith.constant 2 : index
    %c8_101 = arith.constant 8 : index
    %199 = memref.load %arg5[%c2_100, %c8_101] : memref<4x9xf32, #tpu.memory_space<smem>>
    %200 = vector.broadcast %199 : f32 to vector<16x16xf32>
    %201 = arith.mulf %198, %200 : vector<16x16xf32>
    %202 = arith.addf %197, %201 : vector<16x16xf32>
    %c2_102 = arith.constant 2 : index
    %c0_103 = arith.constant 0 : index
    %c0_104 = arith.constant 0 : index
    %203 = vector.load %arg10[%c2_102, %c0_103, %c0_104] : memref<4x16x16xf32, #tpu.memory_space<vmem>>, vector<1x16x16xf32>
    %204 = vector.shape_cast %203 : vector<1x16x16xf32> to vector<16x16xf32>
    %205 = vector.shape_cast %202 : vector<16x16xf32> to vector<1x16x16xf32>
    tpu.vector_store %arg10[%c2_102, %c0_103, %c0_104], %205 {strides = array<i32>} : memref<4x16x16xf32, #tpu.memory_space<vmem>>, vector<1x16x16xf32>,
    %c0_105 = arith.constant 0 : index
    %c3_106 = arith.constant 3 : index
    %c0_107 = arith.constant 0 : index
    %c0_108 = arith.constant 0 : index
    %206 = vector.load %arg2[%c0_105, %c3_106, %c0_107, %c0_108] : memref<1x4x16x16xf32, #tpu.memory_space<vmem>>, vector<1x1x16x16xf32>
    %207 = vector.shape_cast %206 : vector<1x1x16x16xf32> to vector<16x16xf32>
    %c0_109 = arith.constant 0 : index
    %c3_110 = arith.constant 3 : index
    %c0_111 = arith.constant 0 : index
    %c0_112 = arith.constant 0 : index
    %208 = vector.load %arg3[%c0_109, %c3_110, %c0_111, %c0_112] : memref<1x4x8x16xf32, #tpu.memory_space<vmem>>, vector<1x1x8x16xf32>
    %209 = vector.shape_cast %208 : vector<1x1x8x16xf32> to vector<8x16xf32>
    %210 = vector.extract_strided_slice %209 {offsets = [7, 0], sizes = [1, 16], strides = [1, 1]} : vector<8x16xf32> to vector<1x16xf32>
    %cst_113 = arith.constant 0.000000e+00 : f32
    %211 = vector.broadcast %cst_113 : f32 to vector<1x16xf32>
    %212 = arith.select %0, %211, %210 : vector<1x16xf32>
    %c0_114 = arith.constant 0 : index
    %c3_115 = arith.constant 3 : index
    %c0_116 = arith.constant 0 : index
    %c0_117 = arith.constant 0 : index
    %213 = vector.load %arg4[%c0_114, %c3_115, %c0_116, %c0_117] : memref<1x4x8x16xf32, #tpu.memory_space<vmem>>, vector<1x1x8x16xf32>
    %214 = vector.shape_cast %213 : vector<1x1x8x16xf32> to vector<8x16xf32>
    %215 = vector.extract_strided_slice %214 {offsets = [0, 0], sizes = [1, 16], strides = [1, 1]} : vector<8x16xf32> to vector<1x16xf32>
    %cst_118 = arith.constant 0.000000e+00 : f32
    %216 = vector.broadcast %cst_118 : f32 to vector<1x16xf32>
    %217 = arith.select %1, %216, %215 : vector<1x16xf32>
    %218 = tpu.concatenate %212, %207, %217 in 0 : vector<1x16xf32>, vector<16x16xf32>, vector<1x16xf32> -> vector<18x16xf32>
    %cst_119 = arith.constant 0.000000e+00 : f32
    %219 = vector.broadcast %cst_119 : f32 to vector<18x1xf32>
    %220 = vector.extract_strided_slice %218 {offsets = [0, 0], sizes = [18, 15], strides = [1, 1]} : vector<18x16xf32> to vector<18x15xf32>
    %221 = tpu.concatenate %219, %220 in 1 : vector<18x1xf32>, vector<18x15xf32> -> vector<18x16xf32>
    %222 = vector.extract_strided_slice %218 {offsets = [0, 1], sizes = [18, 15], strides = [1, 1]} : vector<18x16xf32> to vector<18x15xf32>
    %223 = tpu.concatenate %222, %219 in 1 : vector<18x15xf32>, vector<18x1xf32> -> vector<18x16xf32>
    %c0_120 = arith.constant 0 : index
    %c3_121 = arith.constant 3 : index
    %224 = memref.load %arg6[%c0_120, %c3_121] : memref<1x4xf32, #tpu.memory_space<smem>>
    %225 = vector.broadcast %224 : f32 to vector<16x16xf32>
    %226 = vector.extract_strided_slice %221 {offsets = [0, 0], sizes = [16, 16], strides = [1, 1]} : vector<18x16xf32> to vector<16x16xf32>
    %c3_122 = arith.constant 3 : index
    %c0_123 = arith.constant 0 : index
    %227 = memref.load %arg5[%c3_122, %c0_123] : memref<4x9xf32, #tpu.memory_space<smem>>
    %228 = vector.broadcast %227 : f32 to vector<16x16xf32>
    %229 = arith.mulf %226, %228 : vector<16x16xf32>
    %230 = arith.addf %225, %229 : vector<16x16xf32>
    %231 = vector.extract_strided_slice %221 {offsets = [1, 0], sizes = [16, 16], strides = [1, 1]} : vector<18x16xf32> to vector<16x16xf32>
    %c3_124 = arith.constant 3 : index
    %c3_125 = arith.constant 3 : index
    %232 = memref.load %arg5[%c3_124, %c3_125] : memref<4x9xf32, #tpu.memory_space<smem>>
    %233 = vector.broadcast %232 : f32 to vector<16x16xf32>
    %234 = arith.mulf %231, %233 : vector<16x16xf32>
    %235 = arith.addf %230, %234 : vector<16x16xf32>
    %236 = vector.extract_strided_slice %221 {offsets = [2, 0], sizes = [16, 16], strides = [1, 1]} : vector<18x16xf32> to vector<16x16xf32>
    %c3_126 = arith.constant 3 : index
    %c6_127 = arith.constant 6 : index
    %237 = memref.load %arg5[%c3_126, %c6_127] : memref<4x9xf32, #tpu.memory_space<smem>>
    %238 = vector.broadcast %237 : f32 to vector<16x16xf32>
    %239 = arith.mulf %236, %238 : vector<16x16xf32>
    %240 = arith.addf %235, %239 : vector<16x16xf32>
    %241 = vector.extract_strided_slice %218 {offsets = [0, 0], sizes = [16, 16], strides = [1, 1]} : vector<18x16xf32> to vector<16x16xf32>
    %c3_128 = arith.constant 3 : index
    %c1_129 = arith.constant 1 : index
    %242 = memref.load %arg5[%c3_128, %c1_129] : memref<4x9xf32, #tpu.memory_space<smem>>
    %243 = vector.broadcast %242 : f32 to vector<16x16xf32>
    %244 = arith.mulf %241, %243 : vector<16x16xf32>
    %245 = arith.addf %240, %244 : vector<16x16xf32>
    %246 = vector.extract_strided_slice %218 {offsets = [1, 0], sizes = [16, 16], strides = [1, 1]} : vector<18x16xf32> to vector<16x16xf32>
    %c3_130 = arith.constant 3 : index
    %c4_131 = arith.constant 4 : index
    %247 = memref.load %arg5[%c3_130, %c4_131] : memref<4x9xf32, #tpu.memory_space<smem>>
    %248 = vector.broadcast %247 : f32 to vector<16x16xf32>
    %249 = arith.mulf %246, %248 : vector<16x16xf32>
    %250 = arith.addf %245, %249 : vector<16x16xf32>
    %251 = vector.extract_strided_slice %218 {offsets = [2, 0], sizes = [16, 16], strides = [1, 1]} : vector<18x16xf32> to vector<16x16xf32>
    %c3_132 = arith.constant 3 : index
    %c7_133 = arith.constant 7 : index
    %252 = memref.load %arg5[%c3_132, %c7_133] : memref<4x9xf32, #tpu.memory_space<smem>>
    %253 = vector.broadcast %252 : f32 to vector<16x16xf32>
    %254 = arith.mulf %251, %253 : vector<16x16xf32>
    %255 = arith.addf %250, %254 : vector<16x16xf32>
    %256 = vector.extract_strided_slice %223 {offsets = [0, 0], sizes = [16, 16], strides = [1, 1]} : vector<18x16xf32> to vector<16x16xf32>
    %c3_134 = arith.constant 3 : index
    %c2_135 = arith.constant 2 : index
    %257 = memref.load %arg5[%c3_134, %c2_135] : memref<4x9xf32, #tpu.memory_space<smem>>
    %258 = vector.broadcast %257 : f32 to vector<16x16xf32>
    %259 = arith.mulf %256, %258 : vector<16x16xf32>
    %260 = arith.addf %255, %259 : vector<16x16xf32>
    %261 = vector.extract_strided_slice %223 {offsets = [1, 0], sizes = [16, 16], strides = [1, 1]} : vector<18x16xf32> to vector<16x16xf32>
    %c3_136 = arith.constant 3 : index
    %c5_137 = arith.constant 5 : index
    %262 = memref.load %arg5[%c3_136, %c5_137] : memref<4x9xf32, #tpu.memory_space<smem>>
    %263 = vector.broadcast %262 : f32 to vector<16x16xf32>
    %264 = arith.mulf %261, %263 : vector<16x16xf32>
    %265 = arith.addf %260, %264 : vector<16x16xf32>
    %266 = vector.extract_strided_slice %223 {offsets = [2, 0], sizes = [16, 16], strides = [1, 1]} : vector<18x16xf32> to vector<16x16xf32>
    %c3_138 = arith.constant 3 : index
    %c8_139 = arith.constant 8 : index
    %267 = memref.load %arg5[%c3_138, %c8_139] : memref<4x9xf32, #tpu.memory_space<smem>>
    %268 = vector.broadcast %267 : f32 to vector<16x16xf32>
    %269 = arith.mulf %266, %268 : vector<16x16xf32>
    %270 = arith.addf %265, %269 : vector<16x16xf32>
    %c3_140 = arith.constant 3 : index
    %c0_141 = arith.constant 0 : index
    %c0_142 = arith.constant 0 : index
    %271 = vector.load %arg10[%c3_140, %c0_141, %c0_142] : memref<4x16x16xf32, #tpu.memory_space<vmem>>, vector<1x16x16xf32>
    %272 = vector.shape_cast %271 : vector<1x16x16xf32> to vector<16x16xf32>
    %273 = vector.shape_cast %270 : vector<16x16xf32> to vector<1x16x16xf32>
    tpu.vector_store %arg10[%c3_140, %c0_141, %c0_142], %273 {strides = array<i32>} : memref<4x16x16xf32, #tpu.memory_space<vmem>>, vector<1x16x16xf32>,
    %c0_143 = arith.constant 0 : index
    %c0_144 = arith.constant 0 : index
    %274 = memref.load %arg8[%c0_143, %c0_144] : memref<1x8xf32, #tpu.memory_space<smem>>
    %275 = vector.broadcast %274 : f32 to vector<16x16xf32>
    %c0_145 = arith.constant 0 : index
    %c0_146 = arith.constant 0 : index
    %c0_147 = arith.constant 0 : index
    %276 = vector.load %arg10[%c0_145, %c0_146, %c0_147] : memref<4x16x16xf32, #tpu.memory_space<vmem>>, vector<1x16x16xf32>
    %277 = vector.shape_cast %276 : vector<1x16x16xf32> to vector<16x16xf32>
    %c0_148 = arith.constant 0 : index
    %c0_149 = arith.constant 0 : index
    %278 = memref.load %arg7[%c0_148, %c0_149] : memref<8x4xf32, #tpu.memory_space<smem>>
    %279 = vector.broadcast %278 : f32 to vector<16x16xf32>
    %280 = arith.mulf %277, %279 : vector<16x16xf32>
    %281 = arith.addf %275, %280 : vector<16x16xf32>
    %c1_150 = arith.constant 1 : index
    %c0_151 = arith.constant 0 : index
    %c0_152 = arith.constant 0 : index
    %282 = vector.load %arg10[%c1_150, %c0_151, %c0_152] : memref<4x16x16xf32, #tpu.memory_space<vmem>>, vector<1x16x16xf32>
    %283 = vector.shape_cast %282 : vector<1x16x16xf32> to vector<16x16xf32>
    %c0_153 = arith.constant 0 : index
    %c1_154 = arith.constant 1 : index
    %284 = memref.load %arg7[%c0_153, %c1_154] : memref<8x4xf32, #tpu.memory_space<smem>>
    %285 = vector.broadcast %284 : f32 to vector<16x16xf32>
    %286 = arith.mulf %283, %285 : vector<16x16xf32>
    %287 = arith.addf %281, %286 : vector<16x16xf32>
    %c2_155 = arith.constant 2 : index
    %c0_156 = arith.constant 0 : index
    %c0_157 = arith.constant 0 : index
    %288 = vector.load %arg10[%c2_155, %c0_156, %c0_157] : memref<4x16x16xf32, #tpu.memory_space<vmem>>, vector<1x16x16xf32>
    %289 = vector.shape_cast %288 : vector<1x16x16xf32> to vector<16x16xf32>
    %c0_158 = arith.constant 0 : index
    %c2_159 = arith.constant 2 : index
    %290 = memref.load %arg7[%c0_158, %c2_159] : memref<8x4xf32, #tpu.memory_space<smem>>
    %291 = vector.broadcast %290 : f32 to vector<16x16xf32>
    %292 = arith.mulf %289, %291 : vector<16x16xf32>
    %293 = arith.addf %287, %292 : vector<16x16xf32>
    %c3_160 = arith.constant 3 : index
    %c0_161 = arith.constant 0 : index
    %c0_162 = arith.constant 0 : index
    %294 = vector.load %arg10[%c3_160, %c0_161, %c0_162] : memref<4x16x16xf32, #tpu.memory_space<vmem>>, vector<1x16x16xf32>
    %295 = vector.shape_cast %294 : vector<1x16x16xf32> to vector<16x16xf32>
    %c0_163 = arith.constant 0 : index
    %c3_164 = arith.constant 3 : index
    %296 = memref.load %arg7[%c0_163, %c3_164] : memref<8x4xf32, #tpu.memory_space<smem>>
    %297 = vector.broadcast %296 : f32 to vector<16x16xf32>
    %298 = arith.mulf %295, %297 : vector<16x16xf32>
    %299 = arith.addf %293, %298 : vector<16x16xf32>
    %c0_165 = arith.constant 0 : index
    %c0_166 = arith.constant 0 : index
    %c0_167 = arith.constant 0 : index
    %c0_168 = arith.constant 0 : index
    %300 = vector.load %arg9[%c0_165, %c0_166, %c0_167, %c0_168] : memref<1x8x16x16xf32, #tpu.memory_space<vmem>>, vector<1x1x16x16xf32>
    %301 = vector.shape_cast %300 : vector<1x1x16x16xf32> to vector<16x16xf32>
    %302 = vector.shape_cast %299 : vector<16x16xf32> to vector<1x1x16x16xf32>
    tpu.vector_store %arg9[%c0_165, %c0_166, %c0_167, %c0_168], %302 {strides = array<i32>} : memref<1x8x16x16xf32, #tpu.memory_space<vmem>>, vector<1x1x16x16xf32>,
    %c0_169 = arith.constant 0 : index
    %c1_170 = arith.constant 1 : index
    %303 = memref.load %arg8[%c0_169, %c1_170] : memref<1x8xf32, #tpu.memory_space<smem>>
    %304 = vector.broadcast %303 : f32 to vector<16x16xf32>
    %c0_171 = arith.constant 0 : index
    %c0_172 = arith.constant 0 : index
    %c0_173 = arith.constant 0 : index
    %305 = vector.load %arg10[%c0_171, %c0_172, %c0_173] : memref<4x16x16xf32, #tpu.memory_space<vmem>>, vector<1x16x16xf32>
    %306 = vector.shape_cast %305 : vector<1x16x16xf32> to vector<16x16xf32>
    %c1_174 = arith.constant 1 : index
    %c0_175 = arith.constant 0 : index
    %307 = memref.load %arg7[%c1_174, %c0_175] : memref<8x4xf32, #tpu.memory_space<smem>>
    %308 = vector.broadcast %307 : f32 to vector<16x16xf32>
    %309 = arith.mulf %306, %308 : vector<16x16xf32>
    %310 = arith.addf %304, %309 : vector<16x16xf32>
    %c1_176 = arith.constant 1 : index
    %c0_177 = arith.constant 0 : index
    %c0_178 = arith.constant 0 : index
    %311 = vector.load %arg10[%c1_176, %c0_177, %c0_178] : memref<4x16x16xf32, #tpu.memory_space<vmem>>, vector<1x16x16xf32>
    %312 = vector.shape_cast %311 : vector<1x16x16xf32> to vector<16x16xf32>
    %c1_179 = arith.constant 1 : index
    %c1_180 = arith.constant 1 : index
    %313 = memref.load %arg7[%c1_179, %c1_180] : memref<8x4xf32, #tpu.memory_space<smem>>
    %314 = vector.broadcast %313 : f32 to vector<16x16xf32>
    %315 = arith.mulf %312, %314 : vector<16x16xf32>
    %316 = arith.addf %310, %315 : vector<16x16xf32>
    %c2_181 = arith.constant 2 : index
    %c0_182 = arith.constant 0 : index
    %c0_183 = arith.constant 0 : index
    %317 = vector.load %arg10[%c2_181, %c0_182, %c0_183] : memref<4x16x16xf32, #tpu.memory_space<vmem>>, vector<1x16x16xf32>
    %318 = vector.shape_cast %317 : vector<1x16x16xf32> to vector<16x16xf32>
    %c1_184 = arith.constant 1 : index
    %c2_185 = arith.constant 2 : index
    %319 = memref.load %arg7[%c1_184, %c2_185] : memref<8x4xf32, #tpu.memory_space<smem>>
    %320 = vector.broadcast %319 : f32 to vector<16x16xf32>
    %321 = arith.mulf %318, %320 : vector<16x16xf32>
    %322 = arith.addf %316, %321 : vector<16x16xf32>
    %c3_186 = arith.constant 3 : index
    %c0_187 = arith.constant 0 : index
    %c0_188 = arith.constant 0 : index
    %323 = vector.load %arg10[%c3_186, %c0_187, %c0_188] : memref<4x16x16xf32, #tpu.memory_space<vmem>>, vector<1x16x16xf32>
    %324 = vector.shape_cast %323 : vector<1x16x16xf32> to vector<16x16xf32>
    %c1_189 = arith.constant 1 : index
    %c3_190 = arith.constant 3 : index
    %325 = memref.load %arg7[%c1_189, %c3_190] : memref<8x4xf32, #tpu.memory_space<smem>>
    %326 = vector.broadcast %325 : f32 to vector<16x16xf32>
    %327 = arith.mulf %324, %326 : vector<16x16xf32>
    %328 = arith.addf %322, %327 : vector<16x16xf32>
    %c0_191 = arith.constant 0 : index
    %c1_192 = arith.constant 1 : index
    %c0_193 = arith.constant 0 : index
    %c0_194 = arith.constant 0 : index
    %329 = vector.load %arg9[%c0_191, %c1_192, %c0_193, %c0_194] : memref<1x8x16x16xf32, #tpu.memory_space<vmem>>, vector<1x1x16x16xf32>
    %330 = vector.shape_cast %329 : vector<1x1x16x16xf32> to vector<16x16xf32>
    %331 = vector.shape_cast %328 : vector<16x16xf32> to vector<1x1x16x16xf32>
    tpu.vector_store %arg9[%c0_191, %c1_192, %c0_193, %c0_194], %331 {strides = array<i32>} : memref<1x8x16x16xf32, #tpu.memory_space<vmem>>, vector<1x1x16x16xf32>,
    %c0_195 = arith.constant 0 : index
    %c2_196 = arith.constant 2 : index
    %332 = memref.load %arg8[%c0_195, %c2_196] : memref<1x8xf32, #tpu.memory_space<smem>>
    %333 = vector.broadcast %332 : f32 to vector<16x16xf32>
    %c0_197 = arith.constant 0 : index
    %c0_198 = arith.constant 0 : index
    %c0_199 = arith.constant 0 : index
    %334 = vector.load %arg10[%c0_197, %c0_198, %c0_199] : memref<4x16x16xf32, #tpu.memory_space<vmem>>, vector<1x16x16xf32>
    %335 = vector.shape_cast %334 : vector<1x16x16xf32> to vector<16x16xf32>
    %c2_200 = arith.constant 2 : index
    %c0_201 = arith.constant 0 : index
    %336 = memref.load %arg7[%c2_200, %c0_201] : memref<8x4xf32, #tpu.memory_space<smem>>
    %337 = vector.broadcast %336 : f32 to vector<16x16xf32>
    %338 = arith.mulf %335, %337 : vector<16x16xf32>
    %339 = arith.addf %333, %338 : vector<16x16xf32>
    %c1_202 = arith.constant 1 : index
    %c0_203 = arith.constant 0 : index
    %c0_204 = arith.constant 0 : index
    %340 = vector.load %arg10[%c1_202, %c0_203, %c0_204] : memref<4x16x16xf32, #tpu.memory_space<vmem>>, vector<1x16x16xf32>
    %341 = vector.shape_cast %340 : vector<1x16x16xf32> to vector<16x16xf32>
    %c2_205 = arith.constant 2 : index
    %c1_206 = arith.constant 1 : index
    %342 = memref.load %arg7[%c2_205, %c1_206] : memref<8x4xf32, #tpu.memory_space<smem>>
    %343 = vector.broadcast %342 : f32 to vector<16x16xf32>
    %344 = arith.mulf %341, %343 : vector<16x16xf32>
    %345 = arith.addf %339, %344 : vector<16x16xf32>
    %c2_207 = arith.constant 2 : index
    %c0_208 = arith.constant 0 : index
    %c0_209 = arith.constant 0 : index
    %346 = vector.load %arg10[%c2_207, %c0_208, %c0_209] : memref<4x16x16xf32, #tpu.memory_space<vmem>>, vector<1x16x16xf32>
    %347 = vector.shape_cast %346 : vector<1x16x16xf32> to vector<16x16xf32>
    %c2_210 = arith.constant 2 : index
    %c2_211 = arith.constant 2 : index
    %348 = memref.load %arg7[%c2_210, %c2_211] : memref<8x4xf32, #tpu.memory_space<smem>>
    %349 = vector.broadcast %348 : f32 to vector<16x16xf32>
    %350 = arith.mulf %347, %349 : vector<16x16xf32>
    %351 = arith.addf %345, %350 : vector<16x16xf32>
    %c3_212 = arith.constant 3 : index
    %c0_213 = arith.constant 0 : index
    %c0_214 = arith.constant 0 : index
    %352 = vector.load %arg10[%c3_212, %c0_213, %c0_214] : memref<4x16x16xf32, #tpu.memory_space<vmem>>, vector<1x16x16xf32>
    %353 = vector.shape_cast %352 : vector<1x16x16xf32> to vector<16x16xf32>
    %c2_215 = arith.constant 2 : index
    %c3_216 = arith.constant 3 : index
    %354 = memref.load %arg7[%c2_215, %c3_216] : memref<8x4xf32, #tpu.memory_space<smem>>
    %355 = vector.broadcast %354 : f32 to vector<16x16xf32>
    %356 = arith.mulf %353, %355 : vector<16x16xf32>
    %357 = arith.addf %351, %356 : vector<16x16xf32>
    %c0_217 = arith.constant 0 : index
    %c2_218 = arith.constant 2 : index
    %c0_219 = arith.constant 0 : index
    %c0_220 = arith.constant 0 : index
    %358 = vector.load %arg9[%c0_217, %c2_218, %c0_219, %c0_220] : memref<1x8x16x16xf32, #tpu.memory_space<vmem>>, vector<1x1x16x16xf32>
    %359 = vector.shape_cast %358 : vector<1x1x16x16xf32> to vector<16x16xf32>
    %360 = vector.shape_cast %357 : vector<16x16xf32> to vector<1x1x16x16xf32>
    tpu.vector_store %arg9[%c0_217, %c2_218, %c0_219, %c0_220], %360 {strides = array<i32>} : memref<1x8x16x16xf32, #tpu.memory_space<vmem>>, vector<1x1x16x16xf32>,
    %c0_221 = arith.constant 0 : index
    %c3_222 = arith.constant 3 : index
    %361 = memref.load %arg8[%c0_221, %c3_222] : memref<1x8xf32, #tpu.memory_space<smem>>
    %362 = vector.broadcast %361 : f32 to vector<16x16xf32>
    %c0_223 = arith.constant 0 : index
    %c0_224 = arith.constant 0 : index
    %c0_225 = arith.constant 0 : index
    %363 = vector.load %arg10[%c0_223, %c0_224, %c0_225] : memref<4x16x16xf32, #tpu.memory_space<vmem>>, vector<1x16x16xf32>
    %364 = vector.shape_cast %363 : vector<1x16x16xf32> to vector<16x16xf32>
    %c3_226 = arith.constant 3 : index
    %c0_227 = arith.constant 0 : index
    %365 = memref.load %arg7[%c3_226, %c0_227] : memref<8x4xf32, #tpu.memory_space<smem>>
    %366 = vector.broadcast %365 : f32 to vector<16x16xf32>
    %367 = arith.mulf %364, %366 : vector<16x16xf32>
    %368 = arith.addf %362, %367 : vector<16x16xf32>
    %c1_228 = arith.constant 1 : index
    %c0_229 = arith.constant 0 : index
    %c0_230 = arith.constant 0 : index
    %369 = vector.load %arg10[%c1_228, %c0_229, %c0_230] : memref<4x16x16xf32, #tpu.memory_space<vmem>>, vector<1x16x16xf32>
    %370 = vector.shape_cast %369 : vector<1x16x16xf32> to vector<16x16xf32>
    %c3_231 = arith.constant 3 : index
    %c1_232 = arith.constant 1 : index
    %371 = memref.load %arg7[%c3_231, %c1_232] : memref<8x4xf32, #tpu.memory_space<smem>>
    %372 = vector.broadcast %371 : f32 to vector<16x16xf32>
    %373 = arith.mulf %370, %372 : vector<16x16xf32>
    %374 = arith.addf %368, %373 : vector<16x16xf32>
    %c2_233 = arith.constant 2 : index
    %c0_234 = arith.constant 0 : index
    %c0_235 = arith.constant 0 : index
    %375 = vector.load %arg10[%c2_233, %c0_234, %c0_235] : memref<4x16x16xf32, #tpu.memory_space<vmem>>, vector<1x16x16xf32>
    %376 = vector.shape_cast %375 : vector<1x16x16xf32> to vector<16x16xf32>
    %c3_236 = arith.constant 3 : index
    %c2_237 = arith.constant 2 : index
    %377 = memref.load %arg7[%c3_236, %c2_237] : memref<8x4xf32, #tpu.memory_space<smem>>
    %378 = vector.broadcast %377 : f32 to vector<16x16xf32>
    %379 = arith.mulf %376, %378 : vector<16x16xf32>
    %380 = arith.addf %374, %379 : vector<16x16xf32>
    %c3_238 = arith.constant 3 : index
    %c0_239 = arith.constant 0 : index
    %c0_240 = arith.constant 0 : index
    %381 = vector.load %arg10[%c3_238, %c0_239, %c0_240] : memref<4x16x16xf32, #tpu.memory_space<vmem>>, vector<1x16x16xf32>
    %382 = vector.shape_cast %381 : vector<1x16x16xf32> to vector<16x16xf32>
    %c3_241 = arith.constant 3 : index
    %c3_242 = arith.constant 3 : index
    %383 = memref.load %arg7[%c3_241, %c3_242] : memref<8x4xf32, #tpu.memory_space<smem>>
    %384 = vector.broadcast %383 : f32 to vector<16x16xf32>
    %385 = arith.mulf %382, %384 : vector<16x16xf32>
    %386 = arith.addf %380, %385 : vector<16x16xf32>
    %c0_243 = arith.constant 0 : index
    %c3_244 = arith.constant 3 : index
    %c0_245 = arith.constant 0 : index
    %c0_246 = arith.constant 0 : index
    %387 = vector.load %arg9[%c0_243, %c3_244, %c0_245, %c0_246] : memref<1x8x16x16xf32, #tpu.memory_space<vmem>>, vector<1x1x16x16xf32>
    %388 = vector.shape_cast %387 : vector<1x1x16x16xf32> to vector<16x16xf32>
    %389 = vector.shape_cast %386 : vector<16x16xf32> to vector<1x1x16x16xf32>
    tpu.vector_store %arg9[%c0_243, %c3_244, %c0_245, %c0_246], %389 {strides = array<i32>} : memref<1x8x16x16xf32, #tpu.memory_space<vmem>>, vector<1x1x16x16xf32>,
    %c0_247 = arith.constant 0 : index
    %c4_248 = arith.constant 4 : index
    %390 = memref.load %arg8[%c0_247, %c4_248] : memref<1x8xf32, #tpu.memory_space<smem>>
    %391 = vector.broadcast %390 : f32 to vector<16x16xf32>
    %c0_249 = arith.constant 0 : index
    %c0_250 = arith.constant 0 : index
    %c0_251 = arith.constant 0 : index
    %392 = vector.load %arg10[%c0_249, %c0_250, %c0_251] : memref<4x16x16xf32, #tpu.memory_space<vmem>>, vector<1x16x16xf32>
    %393 = vector.shape_cast %392 : vector<1x16x16xf32> to vector<16x16xf32>
    %c4_252 = arith.constant 4 : index
    %c0_253 = arith.constant 0 : index
    %394 = memref.load %arg7[%c4_252, %c0_253] : memref<8x4xf32, #tpu.memory_space<smem>>
    %395 = vector.broadcast %394 : f32 to vector<16x16xf32>
    %396 = arith.mulf %393, %395 : vector<16x16xf32>
    %397 = arith.addf %391, %396 : vector<16x16xf32>
    %c1_254 = arith.constant 1 : index
    %c0_255 = arith.constant 0 : index
    %c0_256 = arith.constant 0 : index
    %398 = vector.load %arg10[%c1_254, %c0_255, %c0_256] : memref<4x16x16xf32, #tpu.memory_space<vmem>>, vector<1x16x16xf32>
    %399 = vector.shape_cast %398 : vector<1x16x16xf32> to vector<16x16xf32>
    %c4_257 = arith.constant 4 : index
    %c1_258 = arith.constant 1 : index
    %400 = memref.load %arg7[%c4_257, %c1_258] : memref<8x4xf32, #tpu.memory_space<smem>>
    %401 = vector.broadcast %400 : f32 to vector<16x16xf32>
    %402 = arith.mulf %399, %401 : vector<16x16xf32>
    %403 = arith.addf %397, %402 : vector<16x16xf32>
    %c2_259 = arith.constant 2 : index
    %c0_260 = arith.constant 0 : index
    %c0_261 = arith.constant 0 : index
    %404 = vector.load %arg10[%c2_259, %c0_260, %c0_261] : memref<4x16x16xf32, #tpu.memory_space<vmem>>, vector<1x16x16xf32>
    %405 = vector.shape_cast %404 : vector<1x16x16xf32> to vector<16x16xf32>
    %c4_262 = arith.constant 4 : index
    %c2_263 = arith.constant 2 : index
    %406 = memref.load %arg7[%c4_262, %c2_263] : memref<8x4xf32, #tpu.memory_space<smem>>
    %407 = vector.broadcast %406 : f32 to vector<16x16xf32>
    %408 = arith.mulf %405, %407 : vector<16x16xf32>
    %409 = arith.addf %403, %408 : vector<16x16xf32>
    %c3_264 = arith.constant 3 : index
    %c0_265 = arith.constant 0 : index
    %c0_266 = arith.constant 0 : index
    %410 = vector.load %arg10[%c3_264, %c0_265, %c0_266] : memref<4x16x16xf32, #tpu.memory_space<vmem>>, vector<1x16x16xf32>
    %411 = vector.shape_cast %410 : vector<1x16x16xf32> to vector<16x16xf32>
    %c4_267 = arith.constant 4 : index
    %c3_268 = arith.constant 3 : index
    %412 = memref.load %arg7[%c4_267, %c3_268] : memref<8x4xf32, #tpu.memory_space<smem>>
    %413 = vector.broadcast %412 : f32 to vector<16x16xf32>
    %414 = arith.mulf %411, %413 : vector<16x16xf32>
    %415 = arith.addf %409, %414 : vector<16x16xf32>
    %c0_269 = arith.constant 0 : index
    %c4_270 = arith.constant 4 : index
    %c0_271 = arith.constant 0 : index
    %c0_272 = arith.constant 0 : index
    %416 = vector.load %arg9[%c0_269, %c4_270, %c0_271, %c0_272] : memref<1x8x16x16xf32, #tpu.memory_space<vmem>>, vector<1x1x16x16xf32>
    %417 = vector.shape_cast %416 : vector<1x1x16x16xf32> to vector<16x16xf32>
    %418 = vector.shape_cast %415 : vector<16x16xf32> to vector<1x1x16x16xf32>
    tpu.vector_store %arg9[%c0_269, %c4_270, %c0_271, %c0_272], %418 {strides = array<i32>} : memref<1x8x16x16xf32, #tpu.memory_space<vmem>>, vector<1x1x16x16xf32>,
    %c0_273 = arith.constant 0 : index
    %c5_274 = arith.constant 5 : index
    %419 = memref.load %arg8[%c0_273, %c5_274] : memref<1x8xf32, #tpu.memory_space<smem>>
    %420 = vector.broadcast %419 : f32 to vector<16x16xf32>
    %c0_275 = arith.constant 0 : index
    %c0_276 = arith.constant 0 : index
    %c0_277 = arith.constant 0 : index
    %421 = vector.load %arg10[%c0_275, %c0_276, %c0_277] : memref<4x16x16xf32, #tpu.memory_space<vmem>>, vector<1x16x16xf32>
    %422 = vector.shape_cast %421 : vector<1x16x16xf32> to vector<16x16xf32>
    %c5_278 = arith.constant 5 : index
    %c0_279 = arith.constant 0 : index
    %423 = memref.load %arg7[%c5_278, %c0_279] : memref<8x4xf32, #tpu.memory_space<smem>>
    %424 = vector.broadcast %423 : f32 to vector<16x16xf32>
    %425 = arith.mulf %422, %424 : vector<16x16xf32>
    %426 = arith.addf %420, %425 : vector<16x16xf32>
    %c1_280 = arith.constant 1 : index
    %c0_281 = arith.constant 0 : index
    %c0_282 = arith.constant 0 : index
    %427 = vector.load %arg10[%c1_280, %c0_281, %c0_282] : memref<4x16x16xf32, #tpu.memory_space<vmem>>, vector<1x16x16xf32>
    %428 = vector.shape_cast %427 : vector<1x16x16xf32> to vector<16x16xf32>
    %c5_283 = arith.constant 5 : index
    %c1_284 = arith.constant 1 : index
    %429 = memref.load %arg7[%c5_283, %c1_284] : memref<8x4xf32, #tpu.memory_space<smem>>
    %430 = vector.broadcast %429 : f32 to vector<16x16xf32>
    %431 = arith.mulf %428, %430 : vector<16x16xf32>
    %432 = arith.addf %426, %431 : vector<16x16xf32>
    %c2_285 = arith.constant 2 : index
    %c0_286 = arith.constant 0 : index
    %c0_287 = arith.constant 0 : index
    %433 = vector.load %arg10[%c2_285, %c0_286, %c0_287] : memref<4x16x16xf32, #tpu.memory_space<vmem>>, vector<1x16x16xf32>
    %434 = vector.shape_cast %433 : vector<1x16x16xf32> to vector<16x16xf32>
    %c5_288 = arith.constant 5 : index
    %c2_289 = arith.constant 2 : index
    %435 = memref.load %arg7[%c5_288, %c2_289] : memref<8x4xf32, #tpu.memory_space<smem>>
    %436 = vector.broadcast %435 : f32 to vector<16x16xf32>
    %437 = arith.mulf %434, %436 : vector<16x16xf32>
    %438 = arith.addf %432, %437 : vector<16x16xf32>
    %c3_290 = arith.constant 3 : index
    %c0_291 = arith.constant 0 : index
    %c0_292 = arith.constant 0 : index
    %439 = vector.load %arg10[%c3_290, %c0_291, %c0_292] : memref<4x16x16xf32, #tpu.memory_space<vmem>>, vector<1x16x16xf32>
    %440 = vector.shape_cast %439 : vector<1x16x16xf32> to vector<16x16xf32>
    %c5_293 = arith.constant 5 : index
    %c3_294 = arith.constant 3 : index
    %441 = memref.load %arg7[%c5_293, %c3_294] : memref<8x4xf32, #tpu.memory_space<smem>>
    %442 = vector.broadcast %441 : f32 to vector<16x16xf32>
    %443 = arith.mulf %440, %442 : vector<16x16xf32>
    %444 = arith.addf %438, %443 : vector<16x16xf32>
    %c0_295 = arith.constant 0 : index
    %c5_296 = arith.constant 5 : index
    %c0_297 = arith.constant 0 : index
    %c0_298 = arith.constant 0 : index
    %445 = vector.load %arg9[%c0_295, %c5_296, %c0_297, %c0_298] : memref<1x8x16x16xf32, #tpu.memory_space<vmem>>, vector<1x1x16x16xf32>
    %446 = vector.shape_cast %445 : vector<1x1x16x16xf32> to vector<16x16xf32>
    %447 = vector.shape_cast %444 : vector<16x16xf32> to vector<1x1x16x16xf32>
    tpu.vector_store %arg9[%c0_295, %c5_296, %c0_297, %c0_298], %447 {strides = array<i32>} : memref<1x8x16x16xf32, #tpu.memory_space<vmem>>, vector<1x1x16x16xf32>,
    %c0_299 = arith.constant 0 : index
    %c6_300 = arith.constant 6 : index
    %448 = memref.load %arg8[%c0_299, %c6_300] : memref<1x8xf32, #tpu.memory_space<smem>>
    %449 = vector.broadcast %448 : f32 to vector<16x16xf32>
    %c0_301 = arith.constant 0 : index
    %c0_302 = arith.constant 0 : index
    %c0_303 = arith.constant 0 : index
    %450 = vector.load %arg10[%c0_301, %c0_302, %c0_303] : memref<4x16x16xf32, #tpu.memory_space<vmem>>, vector<1x16x16xf32>
    %451 = vector.shape_cast %450 : vector<1x16x16xf32> to vector<16x16xf32>
    %c6_304 = arith.constant 6 : index
    %c0_305 = arith.constant 0 : index
    %452 = memref.load %arg7[%c6_304, %c0_305] : memref<8x4xf32, #tpu.memory_space<smem>>
    %453 = vector.broadcast %452 : f32 to vector<16x16xf32>
    %454 = arith.mulf %451, %453 : vector<16x16xf32>
    %455 = arith.addf %449, %454 : vector<16x16xf32>
    %c1_306 = arith.constant 1 : index
    %c0_307 = arith.constant 0 : index
    %c0_308 = arith.constant 0 : index
    %456 = vector.load %arg10[%c1_306, %c0_307, %c0_308] : memref<4x16x16xf32, #tpu.memory_space<vmem>>, vector<1x16x16xf32>
    %457 = vector.shape_cast %456 : vector<1x16x16xf32> to vector<16x16xf32>
    %c6_309 = arith.constant 6 : index
    %c1_310 = arith.constant 1 : index
    %458 = memref.load %arg7[%c6_309, %c1_310] : memref<8x4xf32, #tpu.memory_space<smem>>
    %459 = vector.broadcast %458 : f32 to vector<16x16xf32>
    %460 = arith.mulf %457, %459 : vector<16x16xf32>
    %461 = arith.addf %455, %460 : vector<16x16xf32>
    %c2_311 = arith.constant 2 : index
    %c0_312 = arith.constant 0 : index
    %c0_313 = arith.constant 0 : index
    %462 = vector.load %arg10[%c2_311, %c0_312, %c0_313] : memref<4x16x16xf32, #tpu.memory_space<vmem>>, vector<1x16x16xf32>
    %463 = vector.shape_cast %462 : vector<1x16x16xf32> to vector<16x16xf32>
    %c6_314 = arith.constant 6 : index
    %c2_315 = arith.constant 2 : index
    %464 = memref.load %arg7[%c6_314, %c2_315] : memref<8x4xf32, #tpu.memory_space<smem>>
    %465 = vector.broadcast %464 : f32 to vector<16x16xf32>
    %466 = arith.mulf %463, %465 : vector<16x16xf32>
    %467 = arith.addf %461, %466 : vector<16x16xf32>
    %c3_316 = arith.constant 3 : index
    %c0_317 = arith.constant 0 : index
    %c0_318 = arith.constant 0 : index
    %468 = vector.load %arg10[%c3_316, %c0_317, %c0_318] : memref<4x16x16xf32, #tpu.memory_space<vmem>>, vector<1x16x16xf32>
    %469 = vector.shape_cast %468 : vector<1x16x16xf32> to vector<16x16xf32>
    %c6_319 = arith.constant 6 : index
    %c3_320 = arith.constant 3 : index
    %470 = memref.load %arg7[%c6_319, %c3_320] : memref<8x4xf32, #tpu.memory_space<smem>>
    %471 = vector.broadcast %470 : f32 to vector<16x16xf32>
    %472 = arith.mulf %469, %471 : vector<16x16xf32>
    %473 = arith.addf %467, %472 : vector<16x16xf32>
    %c0_321 = arith.constant 0 : index
    %c6_322 = arith.constant 6 : index
    %c0_323 = arith.constant 0 : index
    %c0_324 = arith.constant 0 : index
    %474 = vector.load %arg9[%c0_321, %c6_322, %c0_323, %c0_324] : memref<1x8x16x16xf32, #tpu.memory_space<vmem>>, vector<1x1x16x16xf32>
    %475 = vector.shape_cast %474 : vector<1x1x16x16xf32> to vector<16x16xf32>
    %476 = vector.shape_cast %473 : vector<16x16xf32> to vector<1x1x16x16xf32>
    tpu.vector_store %arg9[%c0_321, %c6_322, %c0_323, %c0_324], %476 {strides = array<i32>} : memref<1x8x16x16xf32, #tpu.memory_space<vmem>>, vector<1x1x16x16xf32>,
    %c0_325 = arith.constant 0 : index
    %c7_326 = arith.constant 7 : index
    %477 = memref.load %arg8[%c0_325, %c7_326] : memref<1x8xf32, #tpu.memory_space<smem>>
    %478 = vector.broadcast %477 : f32 to vector<16x16xf32>
    %c0_327 = arith.constant 0 : index
    %c0_328 = arith.constant 0 : index
    %c0_329 = arith.constant 0 : index
    %479 = vector.load %arg10[%c0_327, %c0_328, %c0_329] : memref<4x16x16xf32, #tpu.memory_space<vmem>>, vector<1x16x16xf32>
    %480 = vector.shape_cast %479 : vector<1x16x16xf32> to vector<16x16xf32>
    %c7_330 = arith.constant 7 : index
    %c0_331 = arith.constant 0 : index
    %481 = memref.load %arg7[%c7_330, %c0_331] : memref<8x4xf32, #tpu.memory_space<smem>>
    %482 = vector.broadcast %481 : f32 to vector<16x16xf32>
    %483 = arith.mulf %480, %482 : vector<16x16xf32>
    %484 = arith.addf %478, %483 : vector<16x16xf32>
    %c1_332 = arith.constant 1 : index
    %c0_333 = arith.constant 0 : index
    %c0_334 = arith.constant 0 : index
    %485 = vector.load %arg10[%c1_332, %c0_333, %c0_334] : memref<4x16x16xf32, #tpu.memory_space<vmem>>, vector<1x16x16xf32>
    %486 = vector.shape_cast %485 : vector<1x16x16xf32> to vector<16x16xf32>
    %c7_335 = arith.constant 7 : index
    %c1_336 = arith.constant 1 : index
    %487 = memref.load %arg7[%c7_335, %c1_336] : memref<8x4xf32, #tpu.memory_space<smem>>
    %488 = vector.broadcast %487 : f32 to vector<16x16xf32>
    %489 = arith.mulf %486, %488 : vector<16x16xf32>
    %490 = arith.addf %484, %489 : vector<16x16xf32>
    %c2_337 = arith.constant 2 : index
    %c0_338 = arith.constant 0 : index
    %c0_339 = arith.constant 0 : index
    %491 = vector.load %arg10[%c2_337, %c0_338, %c0_339] : memref<4x16x16xf32, #tpu.memory_space<vmem>>, vector<1x16x16xf32>
    %492 = vector.shape_cast %491 : vector<1x16x16xf32> to vector<16x16xf32>
    %c7_340 = arith.constant 7 : index
    %c2_341 = arith.constant 2 : index
    %493 = memref.load %arg7[%c7_340, %c2_341] : memref<8x4xf32, #tpu.memory_space<smem>>
    %494 = vector.broadcast %493 : f32 to vector<16x16xf32>
    %495 = arith.mulf %492, %494 : vector<16x16xf32>
    %496 = arith.addf %490, %495 : vector<16x16xf32>
    %c3_342 = arith.constant 3 : index
    %c0_343 = arith.constant 0 : index
    %c0_344 = arith.constant 0 : index
    %497 = vector.load %arg10[%c3_342, %c0_343, %c0_344] : memref<4x16x16xf32, #tpu.memory_space<vmem>>, vector<1x16x16xf32>
    %498 = vector.shape_cast %497 : vector<1x16x16xf32> to vector<16x16xf32>
    %c7_345 = arith.constant 7 : index
    %c3_346 = arith.constant 3 : index
    %499 = memref.load %arg7[%c7_345, %c3_346] : memref<8x4xf32, #tpu.memory_space<smem>>
    %500 = vector.broadcast %499 : f32 to vector<16x16xf32>
    %501 = arith.mulf %498, %500 : vector<16x16xf32>
    %502 = arith.addf %496, %501 : vector<16x16xf32>
    %c0_347 = arith.constant 0 : index
    %c7_348 = arith.constant 7 : index
    %c0_349 = arith.constant 0 : index
    %c0_350 = arith.constant 0 : index
    %503 = vector.load %arg9[%c0_347, %c7_348, %c0_349, %c0_350] : memref<1x8x16x16xf32, #tpu.memory_space<vmem>>, vector<1x1x16x16xf32>
    %504 = vector.shape_cast %503 : vector<1x1x16x16xf32> to vector<16x16xf32>
    %505 = vector.shape_cast %502 : vector<16x16xf32> to vector<1x1x16x16xf32>
    tpu.vector_store %arg9[%c0_347, %c7_348, %c0_349, %c0_350], %505 {strides = array<i32>} : memref<1x8x16x16xf32, #tpu.memory_space<vmem>>, vector<1x1x16x16xf32>,
    return
  }
  func.func @transform_0(%arg0: i32, %arg1: i32) -> (i32, i32, i32, i32) {
    %c0_i32 = arith.constant 0 : i32
    %c0_i32_0 = arith.constant 0 : i32
    %c0_i32_1 = arith.constant 0 : i32
    return %arg0, %c0_i32, %arg1, %c0_i32_0 : i32, i32, i32, i32
  }
  func.func @transform_1(%arg0: i32, %arg1: i32) -> (i32, i32, i32, i32) {
    %c2_i32 = arith.constant 2 : i32
    %0 = arith.muli %arg1, %c2_i32 : i32
    %c1_i32 = arith.constant 1 : i32
    %1 = arith.subi %0, %c1_i32 : i32
    %c0_i32 = arith.constant 0 : i32
    %2 = arith.maxsi %1, %c0_i32 : i32
    %c0_i32_0 = arith.constant 0 : i32
    %c0_i32_1 = arith.constant 0 : i32
    %c0_i32_2 = arith.constant 0 : i32
    return %arg0, %c0_i32_0, %2, %c0_i32_1 : i32, i32, i32, i32
  }
  func.func @transform_2(%arg0: i32, %arg1: i32) -> (i32, i32, i32, i32) {
    %c1_i32 = arith.constant 1 : i32
    %0 = arith.addi %arg1, %c1_i32 : i32
    %c2_i32 = arith.constant 2 : i32
    %1 = arith.muli %0, %c2_i32 : i32
    %c1_i32_0 = arith.constant 1 : i32
    %2 = arith.minsi %1, %c1_i32_0 : i32
    %c0_i32 = arith.constant 0 : i32
    %c0_i32_1 = arith.constant 0 : i32
    %c0_i32_2 = arith.constant 0 : i32
    return %arg0, %c0_i32, %2, %c0_i32_1 : i32, i32, i32, i32
  }
  func.func @transform_3(%arg0: i32, %arg1: i32) -> (i32, i32) {
    %c0_i32 = arith.constant 0 : i32
    %c0_i32_0 = arith.constant 0 : i32
    %c0_i32_1 = arith.constant 0 : i32
    return %c0_i32, %c0_i32_0 : i32, i32
  }
  func.func @transform_4(%arg0: i32, %arg1: i32) -> (i32, i32) {
    %c0_i32 = arith.constant 0 : i32
    %c0_i32_0 = arith.constant 0 : i32
    %c0_i32_1 = arith.constant 0 : i32
    return %c0_i32, %c0_i32_0 : i32, i32
  }
  func.func @transform_5(%arg0: i32, %arg1: i32) -> (i32, i32) {
    %c0_i32 = arith.constant 0 : i32
    %c0_i32_0 = arith.constant 0 : i32
    %c0_i32_1 = arith.constant 0 : i32
    return %c0_i32, %c0_i32_0 : i32, i32
  }
  func.func @transform_6(%arg0: i32, %arg1: i32) -> (i32, i32) {
    %c0_i32 = arith.constant 0 : i32
    %c0_i32_0 = arith.constant 0 : i32
    %c0_i32_1 = arith.constant 0 : i32
    return %c0_i32, %c0_i32_0 : i32, i32
  }
  func.func @transform_7(%arg0: i32, %arg1: i32) -> (i32, i32, i32, i32) {
    %c0_i32 = arith.constant 0 : i32
    %c0_i32_0 = arith.constant 0 : i32
    %c0_i32_1 = arith.constant 0 : i32
    return %arg0, %c0_i32, %arg1, %c0_i32_0 : i32, i32, i32, i32
  }
}

</mosaic_0001>

<bundles_post_ra>
// kernel: tpu_custom_call.1
= control target key start
LH: loop header
LB: loop body
LE: loop exit
PB: predicated region body
PF: predicated region fallthrough
CT: control target
= control target key end

     0   :  { %s3502_s0 = inlined_call_operand.hbm [shape: f32[2,4,16,16], index: 0, kind: input, shape index: {}]   ;;  %s3503_s1 = inlined_call_operand.hbm [shape: f32[2,4,16,16], index: 1, kind: input, shape index: {}]   ;;  %s3504_s2 = inlined_call_operand.hbm [shape: f32[2,4,16,16], index: 2, kind: input, shape index: {}]   ;;  %s3505_s3 = inlined_call_operand.vmem [shape: f32[4,9], index: 3, kind: input, shape index: {}]   ;;  %s3506_s4 = inlined_call_operand.vmem [shape: f32[1,4], index: 4, kind: input, shape index: {}]   ;;  %s3507_s5 = inlined_call_operand.vmem [shape: f32[8,4], index: 5, kind: input, shape index: {}]   ;;  %s3508_s6 = inlined_call_operand.vmem [shape: f32[1,8], index: 6, kind: input, shape index: {}]   ;;  %s3509_s7 = inlined_call_operand.hbm [shape: f32[2,8,16,16], index: 7, kind: output, shape index: {}]  }
   0x1   :  { %3585 = sst [smem:[#allocation62_spill]] %s3502_s0 }
   0x2   :  { %3586 = sst [smem:[#allocation63_spill]] %s3503_s1 }
   0x3   :  { %3587 = sst [smem:[#allocation64_spill]] %s3504_s2 }
   0x4   :  { %3588 = sst [smem:[#allocation65_spill]] %s3505_s3 }
   0x5   :  { %3589 = sst [smem:[#allocation66_spill]] %s3506_s4 }
   0x6   :  { %3590 = sst [smem:[#allocation67_spill]] %s3507_s5 }
   0x7   :  { %3591 = sst [smem:[#allocation68_spill]] %s3508_s6 }
   0x8   :  { %3592 = sst [smem:[#allocation69_spill]] %s3509_s7 }
   0x9   :  { %12 = vsyncpa [#allocation4], 0 }
   0xa   :  { %14 = vsyncpa [#allocation4 + $0x1], 0 }
   0xb   :  { %15 = vsyncpa [#allocation8], 0 }
   0xc   :  { %17 = vsyncpa [#allocation8 + $0x1], 0 }
   0xd   :  { %18 = vsyncpa [#allocation6], 0 }
   0xe   :  { %19 = vsyncpa [#allocation12], 0 }
   0xf   :  { %20 = vsyncpa [#allocation15], 0 }
  0x10   :  { %21 = vsyncpa [#allocation5], 0 }
  0x11   :  { %23 = vsyncpa [#allocation5 + $0x1], 0  ;;  %s2246_s24 = smov 0   ;;  %s2248_s25 = smov 0  }
  0x12   :  { %s2250_s26 = smov 0   ;;  %s2252_s27 = smov 0  }
  0x13   :  { %s2254_s28 = smov 0   ;;  %s2256_s29 = smov 0  }
  0x14 LB: > { %3593 = sst [smem:[#allocation23_spill]] %s2168_s24  ;;  %s2277_s30 = sadd.s32 4294967295, %s2188_s29   ;;  %s2188_s29 = sphi %s2256_s29, %s29_s29   ;;  %s2184_s28 = sphi %s2254_s28, %s3802_s28   ;;  %s2180_s27 = sphi %s2252_s27, %s3801_s27   ;;  %s2176_s26 = sphi %s2250_s26, %s3800_s26   ;;  %s2172_s25 = sphi %s2248_s25, %s3799_s25   ;;  %s2168_s24 = sphi %s2246_s24, %s3798_s24  }
  0x15   : > { %3594 = sst [smem:[#allocation24_spill]] %s2172_s25  ;;  %s1681_s8 = sadd.s32 4294967294, %s2188_s29  }
  0x16   : > { %3595 = sst [smem:[#allocation25_spill]] %s2176_s26  ;;  %p63_p0 = scmp.ne.s32.totalorder %s2172_s25, %s2168_s24 }
  0x17   : > { %3596 = sst [smem:[#allocation26_spill]] %s2180_s27  ;;  %p3514_p1 = scmp.eq.s32.totalorder %s2277_s30, 0 }
  0x18   : > { %3597 = sst [smem:[#allocation27_spill]] %s2184_s28  ;;  %p251_p3 = scmp.eq.s32.totalorder %s1681_s8, 1 }
  0x19   : > { %3598 = sst [smem:[#allocation28_spill]] %s2188_s29  ;;  %p2286_p4 = por %p3514_p1, %p63_p0 }
  0x1a   : > { %p1682_p5 = scmp.ge.s32.totalorder %s2188_s29, 1  ;;  %p2291_p6 = por %p251_p3, %p63_p0 }
  0x1b   : > { %s3599_s9 = scalar_select %p2286_p4, 1, 0 }
  0x1c   : > { %s3600_s10 = scalar_select %p2291_p6, 1, 0 }
  0x1d   : > { %p258_p7 = scmp.lt.s32.totalorder %s2188_s29, 3  ;;  %s3602_s4 = sld [smem:[#allocation66_spill]] }
  0x1e   : > { %3601 = sst [smem:[#allocation29_spill]] %s3600_s10  ;;  %s41_s16 = sadd.s32 1, %s2184_s28 }
  0x1f   : > { %p2299_p8 = pnand %p1682_p5, %p258_p7  ;;  %s50_s17 = sadd.s32 1, %s2176_s26 }
  0x20   : > { %p43_p12 = scmp.ge.s32.totalorder %s41_s16, 2 }
  0x21   : > { %s3603_s14 = scalar_select %p2299_p8, 1, 0 }
  0x22   : > { %p1843_p10 = pneg %p2299_p8 }
  0x23   : > { %s282_s13 = sshll.u32 %s3602_s4, 4  ;;  %s283_s13 = int_to_ptr.vmem [resolvable:$true] %s282_s13 }
  0x24   : > { %p2308_p11 = pnand %p1843_p10, %p3514_p1  ;;  %s1940_s18 = scalar_lea.vmem %s283_s13, 16 }
  0x25   : > { %p1941_p13 = scmp.ne.s32.totalorder %s283_s13, %s1940_s18  ;;  %p1948_p7 = scmp.lt.s32.totalorder %s283_s13, %s283_s13 }
  0x26   : > { %s3604_s15 = scalar_select %p2308_p11, 1, 0 }
  0x27   : > { %p3515_p0 = pneg %p2308_p11  ;;  %p1949_p9 = scmp.lt.s32.totalorder %s1940_s18, %s1940_s18 }
  0x29   : > { %p1943_p3 = pnand %p3515_p0, %p1941_p13  ;;  %p1950_p2 = por %p1949_p9, %p1948_p7 }
  0x2b   : > { %p1944_p5 = pneg %p1943_p3 }
  0x2d   : > { %p1951_p10 = pnand %p1950_p2, %p1944_p5 }
  0x2f   : > { %1954 = shalt.err (!%p1951_p10)
}
  0x30   : > { %s2190_s19 = smov [#allocation11]   ;;  %s3804_s16 = smov (%p43_p12, %s41_s16), 0 }
  0x31   : > { %1849 = dma.vmem_to_smem (!%p2308_p11), %s283_s13, 16, %s2190_s19, [#allocation12]  }
  0x32   : > { %3605 = sst [smem:[#allocation30_spill]] %s3804_s16  ;;  %p57_p9 = scmp.ne.s32.totalorder %s2176_s26, %s2172_s25 }
  0x33   : > { %p58_p2 = scmp.eq.s32.totalorder %s2188_s29, 0  ;;  %s45_s20 = ssub.s32 %s2184_s28, %s3804_s16 }
  0x34   : > { %p1874_p13 = scmp.lt.s32.totalorder %s2188_s29, 2  ;;  %p48_p3 = scmp.eq.s32.totalorder %s45_s20, 0 }
  0x35   : > { %p59_p5 = por %p58_p2, %p57_p9  ;;  %p3606_p7 = scmp.eq.s32.totalorder %s2277_s30, 1 }
  0x36   : > { %s2336_s22 = sand.u32 1, %s2176_s26   ;;  %s2342_s8 = sshll.u32 %s2184_s28, 10 }
  0x37   : > { %p2331_p10 = por %p3606_p7, %p57_p9  ;;  %p2344_p12 = pnand %p1874_p13, %p59_p5 }
  0x38   : > { %s2339_s23 = scalar_select %p48_p3, %s2176_s26, %s50_s17  }
  0x39   : > { %s3607_s21 = scalar_select %p2331_p10, 1, 0 }
  0x3a   : > { %3609 = sst [smem:[#allocation32_spill]] %s2339_s23  ;;  %s338_s12 = sand.u32 1, %s2188_s29  }
  0x3b   : > { %3608 = sst [smem:[#allocation31_spill]] %s3607_s21  ;;  %s3512_s13 = sshll.u32 %s2336_s22, 5 }
  0x3c   : > { %s3610_s11 = scalar_select %p2344_p12, 1, 0 }
  0x3d   : > { %s3611_s1 = sld [smem:[#allocation63_spill]]  ;;  %s342_s17 = scalar_lea.vmem [#allocation7], %s3512_s13 }
  0x3e   : > { %s354_s4 = sshll.u32 %s342_s17, 4  ;;  %s2360_s16 = scalar_lea.sflag [#allocation8], %s338_s12  ;;  %s2358_s4 = int_to_ptr.vmem [resolvable:$true] %s354_s4 }
  0x3f   : > { %p2366_p2 = pneg %p2344_p12 }
  0x41   : > { %s3612_s23 = scalar_select %p2366_p2, 1, 0 }
  0x43   : > { %s2354_s20 = scalar_lea.hbm %s3611_s1, %s2342_s8  ;;  %s1960_s13 = scalar_lea.hbm %s3611_s1, 2048 }
  0x44   : > { %s1955_s28 = scalar_lea.hbm %s2354_s20, 512  ;;  %p1961_p5 = scmp.lt.u32.totalorder %s2354_s20, %s3611_s1 }
  0x45   : > { %p1956_p9 = scmp.ne.s32.totalorder %s2354_s20, %s1955_s28  ;;  %p1962_p7 = scmp.lt.u32.totalorder %s1960_s13, %s1955_s28 }
  0x46   : > { %p1964_p0 = scmp.lt.u32.totalorder %s1955_s28, %s2354_s20 }
  0x47   : > { %p1958_p13 = pnand %p2366_p2, %p1956_p9  ;;  %p1963_p1 = por %p1962_p7, %p1961_p5 }
  0x49   : > { %p1959_p3 = pneg %p1958_p13  ;;  %p1965_p6 = por %p1964_p0, %p1963_p1 }
  0x4b   : > { %p1966_p10 = pnand %p1965_p6, %p1959_p3 }
  0x4d   : > { %1969 = shalt.err (!%p1966_p10)
}
  0x4e   : > { %s1970_s12 = scalar_lea.vmem %s2358_s4, 512  ;;  %s2191_s18 = smov [#allocation7]  }
  0x4f   : > { %p1971_p9 = scmp.ne.s32.totalorder %s2358_s4, %s1970_s12  ;;  %s1975_s19 = sshll.u32 %s2191_s18, 4  ;;  %s1976_s19 = int_to_ptr.vmem [resolvable:$false] %s1975_s19 }
  0x50   : > { %s1977_s26 = scalar_lea.vmem %s1976_s19, 1024  ;;  %p1978_p8 = scmp.lt.s32.totalorder %s2358_s4, %s1976_s19 }
  0x51   : > { %p1973_p13 = pnand %p1971_p9, %p2366_p2  ;;  %p1979_p11 = scmp.lt.s32.totalorder %s1977_s26, %s1970_s12 }
  0x53   : > { %p1974_p4 = pneg %p1973_p13  ;;  %p1980_p5 = por %p1979_p11, %p1978_p8 }
  0x55   : > { %p1981_p7 = pnand %p1980_p5, %p1974_p4 }
  0x57   : > { %1984 = shalt.err (!%p1981_p7)
}
  0x58   : > { %s3532_s28 = smov 256   ;;  %s2193_s13 = smov 128  }
  0x59   : > { %s2194_s17 = smov 8   ;;  %s3613_s18 = sshll.u32 %s2336_s22, 5 }
  0x5a   : > { %1862 = dma.hbm_to_vmem [thread:$0]  (!%p2344_p12), %s2354_s20, 512, %s2358_s4, %s2360_s16, %s3532_s28, %s2193_s13, %s2194_s17  }
  0x5b   : > { %s368_s19 = scalar_lea.vmem [#allocation9], %s3613_s18  ;;  %s3614_s3 = sld [smem:[#allocation65_spill]] }
  0x5c   : > { %s380_s12 = sshll.u32 %s368_s19, 4  ;;  %s3615_s5 = sld [smem:[#allocation67_spill]]  ;;  %s2395_s12 = int_to_ptr.vmem [resolvable:$true] %s380_s12 }
  0x5d   : > { %p3616_p4 = scmp.ne.s32.totalorder %s3604_s15, 0 }
  0x5f   : > { %p3617_p6 = pneg %p3616_p4 }
  0x61   : > { %s271_s29 = sshll.u32 %s3614_s3, 4  ;;  %s272_s29 = int_to_ptr.vmem [resolvable:$true] %s271_s29 }
  0x62   : > { %s293_s21 = sshll.u32 %s3615_s5, 4  ;;  %s1985_s7 = scalar_lea.vmem %s272_s29, 64  ;;  %s294_s21 = int_to_ptr.vmem [resolvable:$true] %s293_s21 }
  0x63   : > { %p1986_p1 = scmp.ne.s32.totalorder %s272_s29, %s1985_s7  ;;  %p1993_p0 = scmp.lt.s32.totalorder %s272_s29, %s272_s29 }
  0x64   : > { %p1994_p10 = scmp.lt.s32.totalorder %s1985_s7, %s1985_s7 }
  0x65   : > { %p1988_p8 = pnand %p1986_p1, %p3617_p6 }
  0x66   : > { %p1995_p3 = por %p1994_p10, %p1993_p0 }
  0x67   : > { %p1989_p11 = pneg %p1988_p8 }
  0x69   : > { %p1996_p9 = pnand %p1995_p3, %p1989_p11 }
  0x6b   : > { %1999 = shalt.err (!%p1996_p9)
}
  0x6c   : > { %s2195_s4 = smov [#allocation10]   ;;  %s2000_s1 = scalar_lea.vmem %s294_s21, 128 }
  0x6d   : > { %1846 = dma.vmem_to_smem (!%p3616_p4), %s272_s29, 64, %s2195_s4, [#allocation6]  }
  0x6e   : > { %p2001_p13 = scmp.ne.s32.totalorder %s294_s21, %s2000_s1  ;;  %p3618_p5 = pmov %p3617_p6 }
  0x6f   : > { %p2008_p2 = scmp.lt.s32.totalorder %s294_s21, %s294_s21  ;;  %p2009_p1 = scmp.lt.s32.totalorder %s2000_s1, %s2000_s1 }
  0x70   : > { %p2003_p7 = pnand %p2001_p13, %p3618_p5 }
  0x71   : > { %p2010_p6 = por %p2009_p1, %p2008_p2 }
  0x72   : > { %p2004_p12 = pneg %p2003_p7 }
  0x74   : > { %p2011_p8 = pnand %p2010_p6, %p2004_p12 }
  0x76   : > { %2014 = shalt.err (!%p2011_p8)
}
  0x77   : > { %s2196_s7 = smov [#allocation13]   ;;  %s3619_s6 = sld [smem:[#allocation68_spill]] }
  0x78   : > { %1852 = dma.vmem_to_smem (!%p3616_p4), %s294_s21, 128, %s2196_s7, [#allocation12]  }
  0x79   : > { %p3620_p0 = pmov %p3618_p5 }
  0x7d   : > { %s304_s29 = sshll.u32 %s3619_s6, 4  ;;  %s305_s29 = int_to_ptr.vmem [resolvable:$true] %s304_s29 }
  0x7e   : > { %s2015_s20 = scalar_lea.vmem %s305_s29, 16  ;;  %p2023_p9 = scmp.lt.s32.totalorder %s305_s29, %s305_s29 }
  0x7f   : > { %p2016_p11 = scmp.ne.s32.totalorder %s305_s29, %s2015_s20  ;;  %p2024_p2 = scmp.lt.s32.totalorder %s2015_s20, %s2015_s20 }
  0x81   : > { %p2018_p10 = pnand %p2016_p11, %p3620_p0  ;;  %p2025_p12 = por %p2024_p2, %p2023_p9 }
  0x83   : > { %p2019_p3 = pneg %p2018_p10 }
  0x85   : > { %p2026_p13 = pnand %p2025_p12, %p2019_p3 }
  0x87   : > { %2029 = shalt.err (!%p2026_p13)
}
  0x88   : > { %s2197_s18 = smov [#allocation14]   ;;  %s1688_s21 = sshll.u32 %s2336_s22, 6 }
  0x89   : > { %1855 = dma.vmem_to_smem (!%p3616_p4), %s305_s29, 16, %s2197_s18, [#allocation15]  }
  0x8a   : > { %s3621_s0 = sld [smem:[#allocation62_spill]]  ;;  %s1816_s1 = sadd.s32 128, %s2342_s8 }
  0x8b   : > { %s319_s7 = scalar_lea.vmem [#allocation3], %s1688_s21  ;;  %s3622_s2 = sld [smem:[#allocation64_spill]] }
  0x8c   : > { %s328_s24 = sshll.u32 %s319_s7, 4  ;;  %s316_s29 = scalar_lea.sflag [#allocation4], %s2336_s22  ;;  %s2434_s24 = int_to_ptr.vmem [resolvable:$true] %s328_s24 }
  0x8d   : > { %p3623_p5 = scmp.ne.s32.totalorder %s3612_s23, 0 }
  0x90   : > { %s2426_s4 = scalar_lea.hbm %s3621_s0, %s2342_s8  ;;  %s2035_s28 = scalar_lea.hbm %s3621_s0, 2048 }
  0x91   : > { %s2432_s20 = scalar_lea.hbm %s3622_s2, %s1816_s1  ;;  %s2030_s18 = scalar_lea.hbm %s2426_s4, 1024 }
  0x92   : > { %p2031_p4 = scmp.ne.s32.totalorder %s2426_s4, %s2030_s18  ;;  %p2036_p6 = scmp.lt.u32.totalorder %s2426_s4, %s3621_s0 }
  0x93   : > { %p2037_p8 = scmp.lt.u32.totalorder %s2035_s28, %s2030_s18  ;;  %p2039_p0 = scmp.lt.u32.totalorder %s2030_s18, %s2426_s4 }
  0x94   : > { %p2033_p7 = pnand %p2031_p4, %p3623_p5 }
  0x95   : > { %p2038_p11 = por %p2037_p8, %p2036_p6 }
  0x96   : > { %p2034_p1 = pneg %p2033_p7 }
  0x97   : > { %p2040_p10 = por %p2039_p0, %p2038_p11 }
  0x99   : > { %p2041_p3 = pnand %p2040_p10, %p2034_p1 }
  0x9b   : > { %2044 = shalt.err (!%p2041_p3)
}
  0x9c   : > { %s2045_s1 = scalar_lea.vmem %s2434_s24, 1024  ;;  %s2198_s7 = smov [#allocation3]  }
  0x9d   : > { %p2046_p9 = scmp.ne.s32.totalorder %s2434_s24, %s2045_s1  ;;  %s2050_s15 = sshll.u32 %s2198_s7, 4  ;;  %s2051_s15 = int_to_ptr.vmem [resolvable:$false] %s2050_s15 }
  0x9e   : > { %s2052_s10 = scalar_lea.vmem %s2051_s15, 2048  ;;  %p2053_p13 = scmp.lt.s32.totalorder %s2434_s24, %s2051_s15 }
  0x9f   : > { %p2048_p2 = pnand %p2046_p9, %p3623_p5  ;;  %p2054_p4 = scmp.lt.s32.totalorder %s2052_s10, %s2045_s1 }
  0xa1   : > { %p2049_p12 = pneg %p2048_p2  ;;  %p2055_p7 = por %p2054_p4, %p2053_p13 }
  0xa3   : > { %p2056_p6 = pnand %p2055_p7, %p2049_p12 }
  0xa5   : > { %2059 = shalt.err (!%p2056_p6)
}
  0xa6   : > { %p3624_p1 = scmp.ne.s32.totalorder %s3610_s11, 0  ;;  %s2060_s28 = scalar_lea.hbm %s2432_s20, 512 }
  0xa7   : > { %p2061_p8 = scmp.ne.s32.totalorder %s2432_s20, %s2060_s28  ;;  %s2065_s26 = scalar_lea.hbm %s3622_s2, 2048 }
  0xa8   : > { %1859 = dma.hbm_to_vmem [thread:$0]  (!%p3624_p1), %s2426_s4, 1024, %s2434_s24, %s316_s29, %s2193_s13, %s2193_s13, %s2194_s17  }
  0xa9   : > { %p2063_p11 = pnand %p2061_p8, %p3623_p5  ;;  %p2066_p10 = scmp.lt.u32.totalorder %s2432_s20, %s3622_s2 }
  0xaa   : > { %p2067_p3 = scmp.lt.u32.totalorder %s2065_s26, %s2060_s28  ;;  %p2069_p2 = scmp.lt.u32.totalorder %s2060_s28, %s2432_s20 }
  0xab   : > { %p2064_p0 = pneg %p2063_p11 }
  0xac   : > { %p2068_p9 = por %p2067_p3, %p2066_p10 }
  0xae   : > { %p2070_p12 = por %p2069_p2, %p2068_p9 }
  0xb0   : > { %p2071_p13 = pnand %p2070_p12, %p2064_p0 }
  0xb2   : > { %2074 = shalt.err (!%p2071_p13)
}
  0xb3   : > { %s2075_s22 = scalar_lea.vmem %s2395_s12, 512  ;;  %s2199_s4 = smov [#allocation9]  }
  0xb4   : > { %p2076_p4 = scmp.ne.s32.totalorder %s2395_s12, %s2075_s22  ;;  %s2080_s24 = sshll.u32 %s2199_s4, 4  ;;  %s2081_s24 = int_to_ptr.vmem [resolvable:$false] %s2080_s24 }
  0xb5   : > { %s2082_s29 = scalar_lea.vmem %s2081_s24, 1024  ;;  %p2083_p8 = scmp.lt.s32.totalorder %s2395_s12, %s2081_s24 }
  0xb6   : > { %p2078_p7 = pnand %p2076_p4, %p3623_p5  ;;  %p2084_p11 = scmp.lt.s32.totalorder %s2082_s29, %s2075_s22 }
  0xb8   : > { %p2079_p6 = pneg %p2078_p7  ;;  %p2085_p10 = por %p2084_p11, %p2083_p8 }
  0xba   : > { %p2086_p3 = pnand %p2085_p10, %p2079_p6 }
  0xbc   : > { %2089 = shalt.err (!%p2086_p3)
}
  0xbd   : > { %s3625_s1 = smov 256   ;;  %p3626_p5 = scmp.ne.s32.totalorder %s3603_s14, 0 }
  0xbe   : > { %1865 = dma.hbm_to_vmem [thread:$0]  (!%p3624_p1), %s2432_s20, 512, %s2395_s12, %s2360_s16, %s3625_s1, %s2193_s13, %s2194_s17  }
  0xbf   : > { %392 = sbr.rel (%p3626_p5) target bundleno = 471 (0x1d7), region = 48 }
  0xc6   : > { %s2491_s23 = sand.u32 1, %s2172_s25   ;;  %p3628_p0 = scmp.ne.s32.totalorder %s3599_s9, 0 }
  0xc7   : > { %3627 = sst [smem:[#allocation33_spill]] %s2491_s23  ;;  %s1698_s7 = sshll.u32 %s2491_s23, 6 }
  0xc8   : > { %s395_s15 = scalar_lea.sflag [#allocation4], %s2491_s23  ;;  %s2495_s10 = scalar_lea.vmem [#allocation3], %s1698_s7 }
  0xc9   : > { %2143 = dma.done.wait (%p3628_p0), %s395_s15, 1024  }
  0xca   : > { %2145 = vsyncadd (%p3628_p0), %s395_s15, 4294966272  ;;  %s403_s16 = sand.u32 1, %s2277_s30  }
  0xcb   : > { %s404_s14 = scalar_lea.sflag [#allocation8], %s403_s16 }
  0xcc   : > { %2147 = dma.done.wait (%p3628_p0), %s404_s14, 1024  }
  0xcd   : > { %2149 = vsyncadd (%p3628_p0), %s404_s14, 4294966272  ;;  %p3629_p1 = scmp.eq.s32.totalorder %s2277_s30, 0 }
  0xcf   : > { %2151 = dma.done.wait (%p3629_p1), [#allocation6], 64   ;;  %p3630_p9 = pmov %p3629_p1 }
  0xd0   : > { %p3631_p2 = pmov %p3629_p1 }
  0xd1   : > { %2153 = vsyncadd (%p3630_p9), [#allocation6], 4294967232 }
  0xd2   : > { %2155 = dma.done.wait (%p3631_p2), [#allocation12], 144   ;;  %p3632_p12 = pmov %p3629_p1 }
  0xd3   : > { %p3633_p13 = pmov %p3629_p1 }
  0xd4   : > { %2157 = vsyncadd (%p3632_p12), [#allocation12], 4294967152 }
  0xd5   : > { %2159 = dma.done.wait (%p3633_p13), [#allocation15], 16   ;;  %p3634_p4 = pmov %p3629_p1 }
  0xd7   : > { %2161 = vsyncadd (%p3634_p4), [#allocation15], 4294967280 }
  0xd8   : > { %437 = sfence }
  0xd9   : > { %v486_v0 = vld [vmem:[%s2495_s10 + $0x8] sm:$0xff]  ;;  %vm499_vm0 = vcmask 1040384   ;;  %v2200_v1 = vmov 0.0   ;;  %v485_v4 = vld [vmem:[%s2495_s10] sm:$0xff]  ;;  %v1714_v5 = vld [vmem:[%s2495_s10 + $0x10] sm:$0xff]  ;;  %s2201_s30 = smov 1  }
  0xda   : > { %v495_v2 = vrot.slane %v2200_v1, 7  ;;  %v501_v3 = vrot.slane %v486_v0, 7  ;;  %v500_v6 = vrot.slane %v485_v4, 7  ;;  %v680_v7 = vrot.slane %v1714_v5, 7  ;;  %v1715_v9 = vld [vmem:[%s2495_s10 + $0x18] sm:$0xff]  ;;  %v1728_v14 = vld [vmem:[%s2495_s10 + $0x20] sm:$0xff] }
  0xdb   : > { %v681_v12 = vrot.slane %v1715_v9, 7  ;;  %v1729_v15 = vld [vmem:[%s2495_s10 + $0x28] sm:$0xff]  ;;  %s1709_s9 = sld [smem:[#allocation10 + $0x4]]  ;;  %v856_v17 = vrot.slane %v1728_v14, 7  ;;  %v1742_v20 = vld [vmem:[%s2495_s10 + $0x30] sm:$0xff]  ;;  %s1710_s13 = sld [smem:[#allocation10 + $0x7]] }
  0xdc   : > { %v2522_v8 = vsel %vm499_vm0, %v501_v3, %v495_v2  ;;  %v2528_v10 = vsel %vm499_vm0, %v495_v2, %v500_v6  ;;  %v2533_v11 = vsel %vm499_vm0, %v495_v2, %v680_v7  ;;  %v2536_v13 = vsel %vm499_vm0, %v500_v6, %v501_v3  ;;  %s1723_s11 = sld [smem:[#allocation10 + $0x84]]  ;;  %s1724_s17 = sld [smem:[#allocation10 + $0x87]]  ;;  %v1743_v24 = vld [vmem:[%s2495_s10 + $0x38] sm:$0xff] }
  0xdd   : > { %517 = vrot.lane.b32.xlu1 %v2522_v8, %s2201_s30  ;;  %513 = vrot.lane.b32.xlu0 %v2528_v10, %s2201_s30  ;;  %v2545_v16 = vsel %vm499_vm0, %v681_v12, %v495_v2  ;;  %v857_v18 = vrot.slane %v1729_v15, 7  ;;  %v2548_v19 = vsel %vm499_vm0, %v680_v7, %v681_v12  ;;  %v1032_v22 = vrot.slane %v1742_v20, 7  ;;  %s1737_s12 = sld [smem:[#allocation10 + $0x104]]  ;;  %s1738_s20 = sld [smem:[#allocation10 + $0x107]] }
  0xde   : > { %v2559_v23 = vsel %vm499_vm0, %v495_v2, %v856_v17  ;;  %v1033_v27 = vrot.slane %v1743_v24, 7  ;;  %vm555_vm1 = vcmask 1046528   ;;  %s2202_s28 = smov 127   ;;  %vm573_vm2 = vcmask 1045504   ;;  %s1751_s18 = sld [smem:[#allocation10 + $0x184]] }
  0xdf   : > { %v2556_v21 = vsel %vm499_vm0, %v856_v17, %v857_v18  ;;  %v2567_v26 = vsel %vm499_vm0, %v495_v2, %v1032_v22  ;;  %v2570_v28 = vsel %vm499_vm0, %v857_v18, %v495_v2  ;;  %s1752_s19 = sld [smem:[#allocation10 + $0x187]]  ;;  %s2682_s26 = sld [smem:[#allocation10 + $0x1]]  ;;  %vm522_vm3 = vcmask 7168  }
  0xe0   : > { %v2580_v35 = vsel %vm499_vm0, %v1033_v27, %v495_v2  ;;  %v2585_v38 = vsel %vm499_vm0, %v1032_v22, %v1033_v27  ;;  %s2684_s8 = sld [smem:[#allocation10 + $0x81]]  ;;  %s2690_s4 = sld [smem:[#allocation10 + $0x3]]  ;;  %vm535_vm4 = vcmask 121856   ;;  %vm663_vm5 = vcmask 130048  }
  0xe1   : > { %693 = vrot.lane.b32.xlu1 %v2533_v11, %s2201_s30  ;;  %515 = vrot.lane.b32.xlu0 %v2536_v13, %s2201_s30  ;;  %v590_v25 = vstv %s1709_s9  ;;  %v607_v30 = vstv %s1710_s13  ;;  %s2686_s21 = sld [smem:[#allocation10 + $0x101]]  ;;  %s2692_s24 = sld [smem:[#allocation10 + $0x6]] }
  0xe2   : > { %v766_v29 = vstv %s1723_s11  ;;  %v593_v31 = vmul.f32 %v590_v25, %v2522_v8  ;;  %v592_v32 = vmul.f32 %v590_v25, %v2536_v13  ;;  %v591_v33 = vmul.f32 %v590_v25, %v2528_v10  ;;  %s2688_s22 = sld [smem:[#allocation10 + $0x181]]  ;;  %s2694_s29 = sld [smem:[#allocation11]] }
  0xe3   : > { %v783_v34 = vstv %s1724_s17  ;;  %v767_v36 = vmul.f32 %v766_v29, %v2533_v11  ;;  %v768_v37 = vmul.f32 %v766_v29, %v2548_v19  ;;  %v610_v39 = vmul.f32 %v607_v30, %v2522_v8  ;;  %s2696_s1 = sld [smem:[#allocation10]]  ;;  %s2698_s7 = sld [smem:[#allocation11 + $0x1]] }
  0xe4   : > { %v769_v40 = vmul.f32 %v766_v29, %v2545_v16  ;;  %v600_v41 = vrot.slane %v593_v31, 1  ;;  %v598_v42 = vrot.slane %v592_v32, 1  ;;  %v786_v43 = vmul.f32 %v783_v34, %v2545_v16  ;;  %s2700_s15 = sld [smem:[#allocation10 + $0x80]]  ;;  %s2702_s10 = sld [smem:[#allocation10 + $0x83]] }
  0xe5   : > { %697 = vrot.lane.b32.xlu1 %v2545_v16, %s2201_s30  ;;  %695 = vrot.lane.b32.xlu0 %v2548_v19, %s2201_s30  ;;  %v597_v44 = vrot.slane %v591_v33, 1  ;;  %v608_v45 = vmul.f32 %v607_v30, %v2528_v10  ;;  %v609_v46 = vmul.f32 %v607_v30, %v2536_v13  ;;  %v942_v47 = vstv %s1737_s12  ;;  %s2704_s16 = sld [smem:[#allocation10 + $0x86]]  ;;  %s2706_s14 = sld [smem:[#allocation11 + $0x2]] }
  0xe6   : > { %v773_v48 = vrot.slane %v767_v36, 1  ;;  %v784_v49 = vmul.f32 %v783_v34, %v2533_v11  ;;  %v774_v50 = vrot.slane %v768_v37, 1  ;;  %v785_v51 = vmul.f32 %v783_v34, %v2548_v19  ;;  %s2710_s9 = sld [smem:[#allocation10 + $0x103]]  ;;  %s2712_s11 = sld [smem:[#allocation10 + $0x106]] }
  0xe7   : > { %v617_v52 = vrot.slane %v610_v39, 2  ;;  %v776_v53 = vrot.slane %v769_v40, 1  ;;  %v793_v54 = vrot.slane %v786_v43, 2  ;;  %v943_v55 = vmul.f32 %v942_v47, %v2559_v23  ;;  %s2714_s13 = sld [smem:[#allocation11 + $0x3]]  ;;  %s2716_s17 = sld [smem:[#allocation10 + $0x180]] }
  0xe8   : > { %v959_v56 = vstv %s1738_s20  ;;  %v2602_v57 = vsel %vm555_vm1, %v598_v42, %v600_v41  ;;  %v944_v58 = vmul.f32 %v942_v47, %v2556_v21  ;;  %v615_v59 = vrot.slane %v609_v46, 2  ;;  %3639 = sst [smem:[#allocation38_spill]] %s2694_s29  ;;  %s2720_s20 = sld [smem:[#allocation10 + $0x186]] }
  0xe9   : > { %871 = vrot.lane.b32.xlu1 %v2556_v21, %s2201_s30  ;;  %869 = vrot.lane.b32.xlu0 %v2559_v23, %s2201_s30  ;;  %v614_v60 = vrot.slane %v608_v45, 2  ;;  %v2608_v61 = vsel %vm555_vm1, %v597_v44, %v598_v42  ;;  %v2611_v62 = vsel %vm555_vm1, %v773_v48, %v774_v50  ;;  %v790_v63 = vrot.slane %v784_v49, 2  ;;  %3640 = sst [smem:[#allocation39_spill]] %s2696_s1  ;;  %s2718_s12 = sld [smem:[#allocation10 + $0x183]] }
  0xea   : > { %v791_v0 = vrot.slane %v785_v51, 2  ;;  %v945_v1 = vmul.f32 %v942_v47, %v2570_v28  ;;  %v2615_v2 = vsel %vm573_vm2, %v615_v59, %v617_v52  ;;  %v2621_v4 = vsel %vm555_vm1, %v774_v50, %v776_v53  ;;  %3641 = sst [smem:[#allocation40_spill]] %s2698_s7  ;;  %s2728_s0 = sld [smem:[#allocation10 + $0x82]] }
  0xeb   : > { %v2618_v3 = vsel %vm573_vm2, %v614_v60, %v615_v59  ;;  %v961_v5 = vmul.f32 %v959_v56, %v2556_v21  ;;  %v949_v7 = vrot.slane %v943_v55, 1  ;;  %v950_v9 = vrot.slane %v944_v58, 1  ;;  %3642 = sst [smem:[#allocation41_spill]] %s2706_s14  ;;  %s2730_s2 = sld [smem:[#allocation10 + $0x85]] }
  0xec   : > { %v2627_v6 = vsel %vm573_vm2, %v790_v63, %v791_v0  ;;  %v962_v12 = vmul.f32 %v959_v56, %v2570_v28  ;;  %v2633_v14 = vsel %vm573_vm2, %v791_v0, %v793_v54  ;;  %v960_v15 = vmul.f32 %v959_v56, %v2559_v23  ;;  %s2732_s3 = sld [smem:[#allocation10 + $0x88]]  ;;  %s2738_s25 = sld [smem:[#allocation14 + $0x1]] }
  0xed   : > { %1045 = vrot.lane.b32.xlu1 %v2567_v26, %s2201_s30  ;;  %873 = vrot.lane.b32.xlu0 %v2570_v28, %s2201_s30  ;;  %v952_v17 = vrot.slane %v945_v1, 1  ;;  %v967_v18 = vrot.slane %v961_v5, 2  ;;  %v2641_v22 = vsel %vm555_vm1, %v949_v7, %v950_v9  ;;  %v1118_v27 = vstv %s1751_s18  ;;  %3644 = sst [smem:[#allocation43_spill]] %s2714_s13  ;;  %s2724_s18 = sld [smem:[#allocation10 + $0x5]] }
  0xee   : > { %v969_v20 = vrot.slane %v962_v12, 2  ;;  %v1119_v29 = vmul.f32 %v1118_v27, %v2567_v26  ;;  %v1120_v30 = vmul.f32 %v1118_v27, %v2585_v38  ;;  %v1135_v31 = vstv %s1752_s19  ;;  %s2726_s19 = sld [smem:[#allocation10 + $0x8]]  ;;  %s2742_s23 = sld [smem:[#allocation14 + $0x2]] }
  0xef   : > { %v2644_v24 = vsel %vm555_vm1, %v950_v9, %v952_v17  ;;  %v1136_v33 = vmul.f32 %v1135_v31, %v2567_v26  ;;  %v1137_v36 = vmul.f32 %v1135_v31, %v2585_v38  ;;  %v1138_v42 = vmul.f32 %v1135_v31, %v2580_v35  ;;  %s2734_s5 = sld [smem:[#allocation14]]  ;;  %s2824_s7 = sld [smem:[#allocation13 + $0x81]] }
  0xf0   : > { %v1125_v32 = vrot.slane %v1119_v29, 1  ;;  %v1126_v34 = vrot.slane %v1120_v30, 1  ;;  %3648 = sst [smem:[#allocation47_spill]] %s2728_s0  ;;  %s2736_s6 = sld [smem:[#allocation13]]  ;;  %v760_v47 = vstv %s2684_s8  ;;  %v936_v48 = vstv %s2686_s21 }
  0xf1   : > { %1049 = vrot.lane.b32.xlu1 %v2580_v35, %s2201_s30  ;;  %1047 = vrot.lane.b32.xlu0 %v2585_v38, %s2201_s30  ;;  %v1142_v39 = vrot.slane %v1136_v33, 2  ;;  %v1143_v40 = vrot.slane %v1137_v36, 2  ;;  %v1145_v44 = vrot.slane %v1138_v42, 2  ;;  %s2708_s30 = sld [smem:[#allocation10 + $0x100]]  ;;  %v1112_v49 = vstv %s2688_s22  ;;  %s2774_s8 = sld [smem:[#allocation14 + $0x6]] }
  0xf2   : > { %v2669_v37 = vsel %vm555_vm1, %v1125_v32, %v1126_v34  ;;  %3649 = sst [smem:[#allocation48_spill]] %s2732_s3  ;;  %s2740_s27 = sld [smem:[#allocation13 + $0x80]]  ;;  %v2764_v51 = vmul.f32 %v760_v47, %v2533_v11  ;;  %v2770_v53 = vmul.f32 %v760_v47, %v2548_v19  ;;  %v2783_v54 = vstv %s2690_s4 }
  0xf3   : > { %3635 = vst [vmem:[#allocation34_spill] sm:$0xff] %v2669_v37  ;;  %v2673_v41 = vsel %vm573_vm2, %v1142_v39, %v1143_v40  ;;  %v2680_v46 = vsel %vm573_vm2, %v1143_v40, %v1145_v44  ;;  %3646 = sst [smem:[#allocation45_spill]] %s2724_s18  ;;  %s2746_s18 = sld [smem:[#allocation13 + $0x100]]  ;;  %v542_v55 = vstv %s2696_s1  ;;  %v2804_v58 = vstv %s2702_s10 }
  0xf4   : > { %3636 = vst [vmem:[#allocation35_spill] sm:$0xff] %v2673_v41  ;;  %3638 = vst [vmem:[#allocation37_spill] sm:$0xff] %v2680_v46  ;;  %3647 = sst [smem:[#allocation46_spill]] %s2726_s19  ;;  %s2752_s3 = sld [smem:[#allocation13 + $0x180]]  ;;  %v2807_v59 = vstv %s2704_s16  ;;  %v2816_v63 = vstv %s2710_s9  ;;  %v2819_v0 = vstv %s2712_s11  ;;  %v2828_v7 = vstv %s2718_s12 }
  0xf5   : > { %528 = vrot.lane.b32.xlu1 %v2536_v13, %s2202_s28  ;;  %526 = vrot.lane.b32.xlu0 %v2528_v10, %s2202_s28  ;;  %3650 = sst [smem:[#allocation49_spill]] %s2734_s5  ;;  %s2748_s19 = sld [smem:[#allocation14 + $0x3]]  ;;  %v2831_v9 = vstv %s2720_s20  ;;  %v2834_v12 = vmul.f32 %v936_v48, %v2556_v21  ;;  %v3678_v46 = vstv %s2700_s15 }
  0xf6   : > { %3651 = sst [smem:[#allocation50_spill]] %s2738_s25  ;;  %s2754_s5 = sld [smem:[#allocation14 + $0x4]] }
  0xf7   : > { %3643 = sst [smem:[#allocation42_spill]] %s2708_s30  ;;  %s2756_s25 = sld [smem:[#allocation13 + $0x200]] }
  0xf8   : > { %3652 = sst [smem:[#allocation51_spill]] %s2742_s23  ;;  %s2758_s23 = sld [smem:[#allocation14 + $0x5]] }
  0xf9   : > { %705 = vrot.lane.b32.xlu1 %v2533_v11, %s2202_s28  ;;  %530 = vrot.lane.b32.xlu0 %v2522_v8, %s2202_s28  ;;  %v966_v8 = vrot.slane %v960_v15, 2  ;;  %3656 = sst [smem:[#allocation55_spill]] %s2774_s8  ;;  %v2780_v11 = vmul.f32 %v1112_v49, %v2567_v26  ;;  %s2788_s21 = sld [smem:[#allocation13 + $0x300]] }
  0xfa   : > { %s2790_s22 = sld [smem:[#allocation14 + $0x7]]  ;;  %s2798_s4 = sld [smem:[#allocation13 + $0x380]] }
  0xfb   : > { %v2649_v25 = vsel %vm573_vm2, %v966_v8, %v967_v18  ;;  %3653 = sst [smem:[#allocation52_spill]] %s2748_s19  ;;  %3657 = vst [vmem:[#allocation56_spill] sm:$0xff] %v2780_v11  ;;  %s2812_s1 = sld [smem:[#allocation10 + $0x108]]  ;;  %v2853_v8 = vstv %s2730_s2 }
  0xfc   : > { %3654 = sst [smem:[#allocation53_spill]] %s2754_s5  ;;  %s2822_s10 = sld [smem:[#allocation13 + $0x1]] }
  0xfd   : > { %709 = vrot.lane.b32.xlu1 %v2545_v16, %s2202_s28  ;;  %707 = vrot.lane.b32.xlu0 %v2548_v19, %s2202_s28  ;;  %v2654_v16 = vsel %vm573_vm2, %v967_v18, %v969_v20  ;;  %v2793_v19 = vmul.f32 %v1112_v49, %v2585_v38  ;;  %s3663_s16 = sld [smem:[#allocation48_spill]]  ;;  %s2836_s9 = sld [smem:[#allocation13 + $0x101]] }
  0xfe   : > { %3655 = sst [smem:[#allocation54_spill]] %s2758_s23  ;;  %s3665_s11 = sld [smem:[#allocation50_spill]] }
  0xff   : > { %3658 = sst [smem:[#allocation57_spill]] %s2788_s21  ;;  %3660 = vst [vmem:[#allocation59_spill] sm:$0xff] %v2793_v19  ;;  %s2838_s13 = sld [smem:[#allocation13 + $0x181]] }
 0x100   : > { %3659 = sst [smem:[#allocation58_spill]] %s2790_s22  ;;  %s3661_s22 = sld [smem:[#allocation45_spill]] }
 0x101   : > { %883 = vrot.lane.b32.xlu1 %v2556_v21, %s2202_s28  ;;  %881 = vrot.lane.b32.xlu0 %v2559_v23, %s2202_s28  ;;  %s2810_s21 = sld [smem:[#allocation10 + $0x105]]  ;;  %s2848_s12 = sld [smem:[#allocation13 + $0x201]]  ;;  %v2896_v49 = vstv %s2812_s1 }
 0x102   : > { %s2850_s20 = sld [smem:[#allocation13 + $0x281]]  ;;  %s3668_s0 = sld [smem:[#allocation57_spill]] }
 0x103   : > { %s2868_s2 = sld [smem:[#allocation10 + $0x182]]  ;;  %s2876_s14 = sld [smem:[#allocation10 + $0x188]] }
 0x104   : > { %s2886_s5 = sld [smem:[#allocation13 + $0x2]]  ;;  %s3679_s1 = sld [smem:[#allocation40_spill]] }
 0x105   : > { %1057 = vrot.lane.b32.xlu1 %v2567_v26, %s2202_s28  ;;  %885 = vrot.lane.b32.xlu0 %v2570_v28, %s2202_s28  ;;  %v1121_v28 = vmul.f32 %v1118_v27, %v2580_v35  ;;  %v2856_v27 = vstv %s3663_s16  ;;  %s2874_s16 = sld [smem:[#allocation10 + $0x185]]  ;;  %s2888_s30 = sld [smem:[#allocation13 + $0x82]] }
 0x106   : > { %v2842_v17 = vstv %s3661_s22  ;;  %s2860_s22 = sld [smem:[#allocation13 + $0x301]]  ;;  %s2900_s23 = sld [smem:[#allocation13 + $0x182]] }
 0x107   : > { %v1128_v43 = vrot.slane %v1121_v28, 1  ;;  %v2893_v47 = vstv %s2810_s21  ;;  %s3685_s15 = sld [smem:[#allocation41_spill]]  ;;  %s3055_s8 = sld [smem:[#allocation13 + $0x202]] }
 0x108   : > { %s3061_s21 = sld [smem:[#allocation13 + $0x282]] }
 0x109   : > { %1061 = vrot.lane.b32.xlu1 %v2580_v35, %s2202_s28  ;;  %1059 = vrot.lane.b32.xlu0 %v2585_v38, %s2202_s28  ;;  %v2677_v45 = vsel %vm555_vm1, %v1126_v34, %v1128_v43  ;;  %s2722_s28 = sld [smem:[#allocation10 + $0x2]]  ;;  %v584_v35 = vstv %s2682_s26  ;;  %s2772_s26 = sld [smem:[#allocation13 + $0x280]]  ;;  %v2927_v5 = vstv %s2876_s14 }
 0x10a   : > { %3637 = vst [vmem:[#allocation36_spill] sm:$0xff] %v2677_v45  ;;  %v2761_v50 = vmul.f32 %v584_v35, %v2528_v10  ;;  %v2767_v52 = vmul.f32 %v584_v35, %v2536_v13  ;;  %v2777_v10 = vmul.f32 %v936_v48, %v2559_v23  ;;  %v2786_v13 = vstv %s2692_s24  ;;  %s2800_s24 = sld [smem:[#allocation10 + $0x102]]  ;;  %3677 = vst [vmem:[#allocation61_spill] sm:$0xff] %v2927_v5  ;;  %s3680_s14 = sld [smem:[#allocation42_spill]] }
 0x10b   : > { %v540_v23 = vstv %s2694_s29  ;;  %s3662_s29 = sld [smem:[#allocation46_spill]]  ;;  %3672 = sst [smem:[#allocation48_spill]] %s2888_s30 }
 0x10c   : > { %3671 = sst [smem:[#allocation46_spill]] %s2886_s5 }
 0x10d   : > { %3675 = sst [smem:[#allocation57_spill]] %s2900_s23  ;;  %s3697_s23 = sld [smem:[#allocation43_spill]] }
 0x10e   : > { %s3087_s30 = sld [smem:[#allocation13 + $0x283]] }
 0x10f   : > { %3645 = sst [smem:[#allocation44_spill]] %s2722_s28  ;;  %s2898_s28 = sld [smem:[#allocation13 + $0x102]] }
 0x110   : > { %s3689_s19 = sld [smem:[#allocation44_spill]]  ;;  %s3092_s5 = sld [smem:[#allocation13 + $0x303]] }
 0x111   : > { %v2845_v18 = vstv %s3662_s29  ;;  %s2862_s29 = sld [smem:[#allocation13 + $0x381]] }
 0x114   : > { %3699 = sst [smem:[#allocation38_spill]] %s3087_s30 }
 0x115   : > { %3673 = sst [smem:[#allocation50_spill]] %s2898_s28  ;;  %s3085_s28 = sld [smem:[#allocation13 + $0x203]] }
 0x116   : > { %3700 = sst [smem:[#allocation40_spill]] %s3092_s5 }
 0x117   : > { %3667 = sst [smem:[#allocation45_spill]] %s2862_s29  ;;  %s3094_s29 = sld [smem:[#allocation13 + $0x383]] }
 0x11b   : > { %3698 = sst [smem:[#allocation39_spill]] %s3085_s28 }
 0x11d   : > { %3701 = sst [smem:[#allocation42_spill]] %s3094_s29 }
 0x14f   : > { %v518_v21 = vpop.permute.xlu1 %517  ;;  %v514_v31 = vpop.permute.xlu0 %513 }
 0x150   : > { %v525_v39 = vsel %vm522_vm3, 0.0, %v518_v21  ;;  %v523_v44 = vsel %vm522_vm3, 0.0, %v514_v31 }
 0x151   : > { %v551_v34 = vmul.f32 %v2783_v54, %v525_v39  ;;  %v569_v15 = vmul.f32 %v2786_v13, %v525_v39  ;;  %v543_v36 = vmul.f32 %v542_v55, %v523_v44  ;;  %v549_v40 = vmul.f32 %v2783_v54, %v523_v44 }
 0x153   : > { %v694_v48 = vpop.permute.xlu1 %693  ;;  %v516_v32 = vpop.permute.xlu0 %515  ;;  %v559_v1 = vrot.slane %v551_v34, 1 }
 0x154   : > { %v524_v21 = vsel %vm522_vm3, 0.0, %v516_v32  ;;  %v567_v32 = vmul.f32 %v2786_v13, %v523_v44  ;;  %v702_v39 = vsel %vm522_vm3, 0.0, %v694_v48  ;;  %v545_v44 = vadd.f32 %v543_v36, %v540_v23 }
 0x155   : > { %v544_v43 = vmul.f32 %v542_v55, %v524_v21  ;;  %v550_v28 = vmul.f32 %v2783_v54, %v524_v21  ;;  %v2912_v33 = vmul.f32 %v2786_v13, %v524_v21  ;;  %v2924_v21 = vstv %s2874_s16  ;;  %s3063_s16 = sld [smem:[#allocation13 + $0x302]] }
 0x156   : > { %3676 = vst [vmem:[#allocation60_spill] sm:$0xff] %v2924_v21  ;;  %v556_v48 = vrot.slane %v549_v40, 1  ;;  %v727_v20 = vmul.f32 %v2804_v58, %v702_v39  ;;  %v3681_v36 = vmov %v3678_v46 }
 0x157   : > { %v698_v30 = vpop.permute.xlu1 %697  ;;  %v546_v29 = vadd.f32 %v544_v43, %v540_v23  ;;  %v557_v35 = vrot.slane %v550_v28, 1  ;;  %v696_v31 = vpop.permute.xlu0 %695  ;;  %v575_v55 = vrot.slane %v2912_v33, 2  ;;  %v721_v33 = vmul.f32 %v3678_v46, %v702_v39 }
 0x158   : > { %v704_v43 = vsel %vm522_vm3, 0.0, %v698_v30  ;;  %v703_v28 = vsel %vm522_vm3, 0.0, %v696_v31  ;;  %v733_v45 = vrot.slane %v727_v20, 1 }
 0x159   : > { %v560_v34 = vsel %vm555_vm1, %v557_v35, %v559_v1  ;;  %v577_v1 = vrot.slane %v569_v15, 2  ;;  %v729_v30 = vmul.f32 %v2804_v58, %v704_v43  ;;  %v728_v31 = vmul.f32 %v2804_v58, %v703_v28 }
 0x15a   : > { %v564_v60 = vadd.f32 %v560_v34, %v546_v29  ;;  %v574_v29 = vrot.slane %v567_v32, 2  ;;  %v746_v15 = vmul.f32 %v2807_v59, %v704_v43  ;;  %v722_v40 = vmul.f32 %v3681_v36, %v703_v28 }
 0x15b   : > { %v872_v42 = vpop.permute.xlu1 %871  ;;  %v870_v38 = vpop.permute.xlu0 %869  ;;  %v578_v34 = vsel %vm573_vm2, %v575_v55, %v577_v1  ;;  %v744_v32 = vmul.f32 %v2807_v59, %v702_v39  ;;  %v736_v1 = vrot.slane %v729_v30, 1  ;;  %v734_v26 = vrot.slane %v728_v31, 1 }
 0x15c   : > { %v879_v13 = vsel %vm522_vm3, 0.0, %v872_v42  ;;  %v878_v56 = vsel %vm522_vm3, 0.0, %v870_v38  ;;  %v558_v42 = vsel %vm555_vm1, %v556_v48, %v557_v35  ;;  %v582_v23 = vadd.f32 %v578_v34, %v564_v60 }
 0x15d   : > { %v904_v46 = vmul.f32 %v2816_v63, %v879_v13  ;;  %v745_v43 = vmul.f32 %v2807_v59, %v703_v28  ;;  %v3682_v38 = vstv %s3679_s1  ;;  %v903_v19 = vmul.f32 %v2816_v63, %v878_v56  ;;  %s3068_s1 = sld [smem:[#allocation13 + $0x382]] }
 0x15e   : > { %v723_v5 = vadd.f32 %v721_v33, %v3682_v38  ;;  %v563_v60 = vadd.f32 %v558_v42, %v545_v44  ;;  %v753_v48 = vrot.slane %v746_v15, 2  ;;  %v3683_v34 = vstv %s3680_s14  ;;  %s3070_s14 = sld [smem:[#allocation13 + $0x3]] }
 0x15f   : > { %v1046_v54 = vpop.permute.xlu1 %1045  ;;  %v874_v58 = vpop.permute.xlu0 %873  ;;  %v898_v36 = vmul.f32 %v3683_v34, %v879_v13  ;;  %v3684_v21 = vmov %v3683_v34  ;;  %v3686_v39 = vmov %v3682_v38  ;;  %v910_v31 = vrot.slane %v904_v46, 1 }
 0x160   : > { %v880_v35 = vsel %vm522_vm3, 0.0, %v874_v58  ;;  %v897_v41 = vmul.f32 %v3684_v21, %v878_v56  ;;  %v724_v30 = vadd.f32 %v722_v40, %v3686_v39  ;;  %v909_v11 = vrot.slane %v903_v19, 1 }
 0x161   : > { %v588_v28 = vadd.f32 %v2767_v52, %v582_v23  ;;  %v735_v20 = vsel %vm555_vm1, %v733_v45, %v734_v26  ;;  %v737_v33 = vsel %vm555_vm1, %v734_v26, %v736_v1  ;;  %v751_v58 = vrot.slane %v745_v43, 2 }
 0x162   : > { %v905_v44 = vmul.f32 %v2816_v63, %v880_v35  ;;  %v750_v15 = vrot.slane %v744_v32, 2  ;;  %v576_v21 = vsel %vm573_vm2, %v574_v29, %v575_v55  ;;  %v921_v42 = vmul.f32 %v2819_v0, %v879_v13 }
 0x163   : > { %v1050_v37 = vpop.permute.xlu1 %1049  ;;  %v1048_v59 = vpop.permute.xlu0 %1047  ;;  %v920_v40 = vmul.f32 %v2819_v0, %v878_v56  ;;  %v581_v46 = vadd.f32 %v576_v21, %v563_v60  ;;  %v3687_v19 = vstv %s3685_s15  ;;  %v922_v52 = vmul.f32 %v2819_v0, %v880_v35  ;;  %s3072_s15 = sld [smem:[#allocation13 + $0x83]] }
 0x164   : > { %v899_v38 = vadd.f32 %v897_v41, %v3687_v19  ;;  %v912_v34 = vrot.slane %v905_v44, 1  ;;  %v740_v23 = vadd.f32 %v735_v20, %v723_v5  ;;  %v741_v26 = vadd.f32 %v737_v33, %v724_v30 }
 0x165   : > { %v911_v1 = vsel %vm555_vm1, %v909_v11, %v910_v31  ;;  %v605_v63 = vadd.f32 %v2602_v57, %v588_v28  ;;  %v752_v55 = vsel %vm573_vm2, %v750_v15, %v751_v58  ;;  %v754_v13 = vsel %vm573_vm2, %v751_v58, %v753_v48 }
 0x166   : > { %v3688_v56 = vmov %v3687_v19  ;;  %v913_v41 = vsel %vm555_vm1, %v910_v31, %v912_v34  ;;  %v927_v43 = vrot.slane %v921_v42, 2  ;;  %v926_v60 = vrot.slane %v920_v40, 2 }
 0x167   : > { %v529_v45 = vpop.permute.xlu1 %528  ;;  %v527_v32 = vpop.permute.xlu0 %526  ;;  %v900_v29 = vadd.f32 %v898_v36, %v3688_v56  ;;  %v1054_v0 = vsel %vm522_vm3, 0.0, %v1046_v54  ;;  %v916_v35 = vadd.f32 %v911_v1, %v899_v38  ;;  %v929_v11 = vrot.slane %v922_v52, 2 }
 0x168   : > { %v537_v5 = vsel %vm535_vm4, %v529_v45, 0.0  ;;  %v2987_v57 = vsel %vm522_vm3, 0.0, %v1050_v37  ;;  %v622_v39 = vadd.f32 %v2615_v2, %v605_v63  ;;  %v757_v30 = vadd.f32 %v752_v55, %v740_v23 }
 0x169   : > { %v758_v48 = vadd.f32 %v754_v13, %v741_v26  ;;  %v917_v36 = vadd.f32 %v913_v41, %v900_v29  ;;  %v2991_v31 = vsel %vm522_vm3, 0.0, %v1048_v59  ;;  %v3690_v28 = vstv %s2716_s17  ;;  %s3694_s17 = sld [smem:[#allocation47_spill]] }
 0x16a   : > { %v2995_v20 = vmul.f32 %v3690_v28, %v1054_v0  ;;  %v632_v54 = vmul.f32 %v2842_v17, %v537_v5  ;;  %v649_v33 = vmul.f32 %v2845_v18, %v537_v5  ;;  %v587_v37 = vadd.f32 %v2761_v50, %v581_v46 }
 0x16b   : > { %v928_v58 = vsel %vm573_vm2, %v926_v60, %v927_v43  ;;  %v3002_v2 = vmul.f32 %v2828_v7, %v1054_v0  ;;  %v3005_v44 = vmul.f32 %v2831_v9, %v1054_v0  ;;  %v3009_v59 = vmul.f32 %v2828_v7, %v2987_v57  ;;  %v706_v15 = vpop.permute.xlu1 %705  ;;  %v531_v21 = vpop.permute.xlu0 %530 }
 0x16c   : > { %v3011_v42 = vadd.f32 %v928_v58, %v916_v35  ;;  %v930_v40 = vsel %vm573_vm2, %v927_v43, %v929_v11  ;;  %v3691_v50 = vmov %v3690_v28  ;;  %v3692_v19 = vstv %s3689_s19  ;;  %s3078_s19 = sld [smem:[#allocation13 + $0x103]] }
 0x16d   : > { %v3017_v46 = vmul.f32 %v3691_v50, %v2991_v31  ;;  %v626_v38 = vmul.f32 %v3692_v19, %v537_v5  ;;  %v934_v34 = vadd.f32 %v930_v40, %v917_v36  ;;  %v536_v52 = vsel %vm535_vm4, %v527_v32, 0.0 }
 0x16e   : > { %v604_v45 = vadd.f32 %v2608_v61, %v587_v37  ;;  %v763_v23 = vadd.f32 %v2764_v51, %v757_v30  ;;  %v638_v26 = vrot.slane %v632_v54, 1  ;;  %v655_v1 = vrot.slane %v649_v33, 2 }
 0x16f   : > { %v3693_v63 = vmov %v3692_v19  ;;  %v631_v13 = vmul.f32 %v2842_v17, %v536_v52  ;;  %v648_v29 = vmul.f32 %v2845_v18, %v536_v52  ;;  %v714_v41 = vsel %vm535_vm4, %v706_v15, 0.0  ;;  %v710_v11 = vpop.permute.xlu1 %709  ;;  %v708_v30 = vpop.permute.xlu0 %707 }
 0x170   : > { %v625_v55 = vmul.f32 %v3693_v63, %v536_v52  ;;  %v621_v56 = vadd.f32 %v2618_v3, %v604_v45  ;;  %v780_v43 = vadd.f32 %v2611_v62, %v763_v23  ;;  %v3033_v61 = vmul.f32 %v2828_v7, %v2991_v31 }
 0x171   : > { %v628_v51 = vadd.f32 %v626_v38, %v622_v39  ;;  %v637_v32 = vrot.slane %v631_v13, 1  ;;  %v538_v60 = vsel %vm535_vm4, %v531_v21, 0.0  ;;  %v654_v5 = vrot.slane %v648_v29, 2 }
 0x172   : > { %v627_v0 = vadd.f32 %v625_v55, %v621_v56  ;;  %v797_v35 = vadd.f32 %v2627_v6, %v780_v43  ;;  %v633_v3 = vmul.f32 %v2842_v17, %v538_v60  ;;  %v940_v36 = vadd.f32 %v2834_v12, %v934_v34 }
 0x173   : > { %v639_v62 = vsel %vm555_vm1, %v637_v32, %v638_v26  ;;  %v3695_v28 = vstv %s3694_s17  ;;  %v650_v7 = vmul.f32 %v2845_v18, %v538_v60  ;;  %v656_v33 = vsel %vm573_vm2, %v654_v5, %v655_v1  ;;  %s3080_s17 = sld [smem:[#allocation13 + $0x183]] }
 0x174   : > { %v801_v54 = vmul.f32 %v3695_v28, %v714_v41  ;;  %v644_v39 = vadd.f32 %v639_v62, %v627_v0  ;;  %v807_v37 = vmul.f32 %v2853_v8, %v714_v41  ;;  %v640_v58 = vrot.slane %v633_v3, 1 }
 0x175   : > { %v657_v6 = vrot.slane %v650_v7, 2  ;;  %v716_v17 = vsel %vm535_vm4, %v710_v11, 0.0  ;;  %v764_v15 = vadd.f32 %v2770_v53, %v758_v48  ;;  %v715_v12 = vsel %vm535_vm4, %v708_v30, 0.0 }
 0x176   : > { %v661_v21 = vadd.f32 %v656_v33, %v644_v39  ;;  %v641_v40 = vsel %vm555_vm1, %v638_v26, %v640_v58  ;;  %v809_v50 = vmul.f32 %v2853_v8, %v716_v17  ;;  %v826_v18 = vmul.f32 %v2856_v27, %v716_v17 }
 0x177   : > { %v824_v19 = vmul.f32 %v2856_v27, %v714_v41  ;;  %v645_v38 = vadd.f32 %v641_v40, %v628_v51  ;;  %v781_v34 = vadd.f32 %v2621_v4, %v764_v15  ;;  %v3696_v52 = vmov %v3695_v28 }
 0x178   : > { %v802_v45 = vmul.f32 %v3696_v52, %v715_v12  ;;  %664 = vst.msk [vmem:[#allocation2] sm:$0xff] %vm663_vm5, %v661_v21  ;;  %v658_v53 = vsel %vm573_vm2, %v655_v1, %v657_v6  ;;  %v816_v48 = vrot.slane %v809_v50, 1  ;;  %v808_v23 = vmul.f32 %v2853_v8, %v715_v12  ;;  %v882_v50 = vpop.permute.xlu0 %881 }
 0x179   : > { %v825_v26 = vmul.f32 %v2856_v27, %v715_v12  ;;  %v1086_v63 = vrot.slane %v3033_v61, 1  ;;  %v662_v4 = vadd.f32 %v658_v53, %v645_v38  ;;  %v798_v55 = vadd.f32 %v2633_v14, %v781_v34 }
 0x17a   : > { %v957_v13 = vadd.f32 %v2644_v24, %v940_v36  ;;  %v813_v1 = vrot.slane %v807_v37, 1  ;;  %v833_v56 = vrot.slane %v826_v18, 2  ;;  %v814_v8 = vrot.slane %v808_v23, 1 }
 0x17b   : > { %v831_v29 = vrot.slane %v825_v26, 2  ;;  %v803_v27 = vadd.f32 %v801_v54, %v797_v35  ;;  %665 = vst.msk [vmem:[#allocation2 + $0x8] sm:$0xff] %vm663_vm5, %v662_v4  ;;  %v804_v41 = vadd.f32 %v802_v45, %v798_v55  ;;  %v939_v14 = vadd.f32 %v2777_v10, %v3011_v42 }
 0x17c   : > { %v974_v43 = vadd.f32 %v2654_v16, %v957_v13  ;;  %v1088_v24 = vrot.slane %v3009_v59, 1  ;;  %v830_v61 = vrot.slane %v824_v19, 2  ;;  %v815_v51 = vsel %vm555_vm1, %v813_v1, %v814_v8  ;;  %v884_v59 = vpop.permute.xlu1 %883 }
 0x17d   : > { %v817_v32 = vsel %vm555_vm1, %v814_v8, %v816_v48  ;;  %v1085_v16 = vrot.slane %v3002_v2, 1  ;;  %v1097_v10 = vmul.f32 %v2831_v9, %v2991_v31  ;;  %v820_v42 = vadd.f32 %v815_v51, %v803_v27 }
 0x17e   : > { %v821_v60 = vadd.f32 %v817_v32, %v804_v41  ;;  %v1098_v0 = vmul.f32 %v2831_v9, %v2987_v57  ;;  %v832_v5 = vsel %vm573_vm2, %v830_v61, %v831_v29  ;;  %v834_v2 = vsel %vm573_vm2, %v831_v29, %v833_v56 }
 0x17f   : > { %v956_v31 = vadd.f32 %v2641_v22, %v939_v14  ;;  %v3702_v35 = vstv %s3697_s23  ;;  %v1087_v11 = vsel %vm555_vm1, %v1085_v16, %v1086_v63  ;;  %v837_v30 = vadd.f32 %v832_v5, %v820_v42  ;;  %v1196_v15 = vld [vmem:[#allocation2] sm:$0xff]  ;;  %s3706_s23 = sld [smem:[#allocation49_spill]] }
 0x180   : > { %v1076_v3 = vadd.f32 %v3017_v46, %v3702_v35  ;;  %v838_v36 = vadd.f32 %v834_v2, %v821_v60  ;;  %v3703_v62 = vmov %v3702_v35  ;;  %v1089_v57 = vsel %vm555_vm1, %v1086_v63, %v1088_v24 }
 0x181   : > { %v1075_v9 = vadd.f32 %v2995_v20, %v3703_v62  ;;  %v891_v28 = vsel %vm535_vm4, %v884_v59, 0.0  ;;  %v1362_v54 = vstv %s3055_s8  ;;  %v1103_v7 = vrot.slane %v1097_v10, 2  ;;  %840 = vst.msk [vmem:[#allocation2 + $0x10] sm:$0xff] %vm663_vm5, %v837_v30 }
 0x182   : > { %841 = vst.msk [vmem:[#allocation2 + $0x18] sm:$0xff] %vm663_vm5, %v838_v36  ;;  %v1399_v22 = vstv %s3061_s21  ;;  %v1436_v46 = vstv %s3063_s16  ;;  %v1473_v39 = vstv %s3068_s1  ;;  %v1105_v33 = vrot.slane %v1098_v0, 2  ;;  %v1197_v29 = vld [vmem:[#allocation2 + $0x8] sm:$0xff]  ;;  %s2203_s16 = smov [#allocation16]  }
 0x183   : > { %v1092_v20 = vadd.f32 %v1087_v11, %v1075_v9  ;;  %v1223_v37 = vstv %s3070_s14  ;;  %v1259_v58 = vstv %s3072_s15  ;;  %v1102_v6 = vrot.slane %v3005_v44, 2  ;;  %v1058_v44 = vpop.permute.xlu1 %1057  ;;  %s2094_s1 = sshll.u32 %s2203_s16, 4  ;;  %s2095_s1 = int_to_ptr.vmem [resolvable:$false] %s2094_s1 }
 0x184   : > { %v1093_v17 = vadd.f32 %v1089_v57, %v1076_v3  ;;  %v3704_v12 = vstv %s2800_s24  ;;  %v3122_v40 = vmul.f32 %v2893_v47, %v891_v28  ;;  %v3125_v18 = vmul.f32 %v2896_v49, %v891_v28  ;;  %s2096_s14 = scalar_lea.vmem %s2095_s1, 4096 }
 0x185   : > { %v978_v21 = vmul.f32 %v3704_v12, %v891_v28  ;;  %v1296_v19 = vstv %s3078_s19  ;;  %v1333_v38 = vstv %s3080_s17  ;;  %v1370_v34 = vstv %s3085_s28  ;;  %s3719_s28 = sld [smem:[#allocation54_spill]] }
 0x186   : > { %v1104_v52 = vsel %vm573_vm2, %v1102_v6, %v1103_v7  ;;  %v1407_v45 = vstv %s3087_s30  ;;  %v1444_v53 = vstv %s3092_s5  ;;  %v1481_v48 = vstv %s3094_s29  ;;  %s3709_s29 = sld [smem:[#allocation51_spill]]  ;;  %s3712_s5 = sld [smem:[#allocation52_spill]] }
 0x187   : > { %v1106_v23 = vsel %vm573_vm2, %v1103_v7, %v1105_v33  ;;  %v1109_v26 = vadd.f32 %v1104_v52, %v1092_v20  ;;  %v3705_v63 = vstv %s2736_s6  ;;  %v890_v55 = vsel %vm535_vm4, %v882_v50, 0.0  ;;  %s3717_s30 = sld [smem:[#allocation53_spill]]  ;;  %s3729_s6 = sld [smem:[#allocation55_spill]] }
 0x188   : > { %v1200_v4 = vmul.f32 %v3705_v63, %v1196_v15  ;;  %v3138_v13 = vadd.f32 %v1106_v23, %v1093_v17  ;;  %v3140_v1 = vadd.f32 %v978_v21, %v974_v43  ;;  %v990_v56 = vrot.slane %v3122_v40, 1  ;;  %v3759_v40 = vld [vmem:[#allocation61_spill] sm:$0xff] }
 0x189   : > { %v973_v8 = vadd.f32 %v2649_v25, %v956_v31  ;;  %v3707_v27 = vstv %s2740_s27  ;;  %v3708_v14 = vstv %s2746_s18  ;;  %v1007_v61 = vrot.slane %v3125_v18, 2  ;;  %s3774_s27 = sld [smem:[#allocation50_spill]] }
 0x18a   : > { %v1236_v41 = vmul.f32 %v3707_v27, %v1196_v15  ;;  %v1273_v24 = vmul.f32 %v3708_v14, %v1196_v15  ;;  %v3150_v43 = vsel %vm535_vm4, %v1058_v44, 0.0  ;;  %v3710_v51 = vstv %s2752_s3  ;;  %s3731_s3 = sld [smem:[#allocation58_spill]] }
 0x18b   : > { %v1310_v32 = vmul.f32 %v3710_v51, %v1196_v15  ;;  %v3711_v16 = vstv %s2756_s25  ;;  %v3713_v10 = vmov %v3704_v12  ;;  %v983_v60 = vmul.f32 %v2893_v47, %v890_v55  ;;  %s3773_s25 = sld [smem:[#allocation48_spill]] }
 0x18c   : > { %v1347_v25 = vmul.f32 %v3711_v16, %v1196_v15  ;;  %v977_v42 = vmul.f32 %v3713_v10, %v890_v55  ;;  %v3714_v59 = vstv %s3706_s23  ;;  %v3715_v5 = vstv %s2772_s26 }
 0x18d   : > { %v3161_v0 = vadd.f32 %v1200_v4, %v3714_v59  ;;  %v1384_v2 = vmul.f32 %v3715_v5, %v1196_v15  ;;  %v3716_v31 = vstv %s3668_s0  ;;  %v3718_v3 = vstv %s2798_s4  ;;  %s3762_s0 = sld [smem:[#allocation45_spill]] }
 0x18e   : > { %v1421_v35 = vmul.f32 %v3716_v31, %v1196_v15  ;;  %v1458_v11 = vmul.f32 %v3718_v3, %v1196_v15  ;;  %v3720_v30 = vmov %v3705_v63  ;;  %v3721_v62 = vmov %v3707_v27 }
 0x18f   : > { %v1201_v36 = vmul.f32 %v3720_v30, %v1197_v29  ;;  %v1237_v9 = vmul.f32 %v3721_v62, %v1197_v29  ;;  %v3722_v57 = vmov %v3708_v14  ;;  %v3723_v7 = vmov %v3710_v51  ;;  %v886_v14 = vpop.permute.xlu0 %885 }
 0x190   : > { %v1274_v28 = vmul.f32 %v3722_v57, %v1197_v29  ;;  %v1311_v33 = vmul.f32 %v3723_v7, %v1197_v29  ;;  %v3724_v20 = vstv %s3665_s11  ;;  %v3725_v17 = vstv %s3709_s29 }
 0x191   : > { %v3179_v6 = vadd.f32 %v1236_v41, %v3724_v20  ;;  %v3183_v12 = vadd.f32 %v1273_v24, %v3725_v17  ;;  %v3726_v15 = vmov %v3711_v16  ;;  %v3727_v50 = vmov %v3715_v5 }
 0x192   : > { %v1348_v21 = vmul.f32 %v3726_v15, %v1197_v29  ;;  %v1385_v52 = vmul.f32 %v3727_v50, %v1197_v29  ;;  %v3728_v44 = vstv %s3712_s5  ;;  %v3730_v63 = vmov %v3716_v31  ;;  %v3735_v31 = vld [vmem:[#allocation56_spill] sm:$0xff]  ;;  %s3772_s5 = sld [smem:[#allocation46_spill]] }
 0x193   : > { %v3191_v23 = vadd.f32 %v1310_v32, %v3728_v44  ;;  %v1422_v4 = vmul.f32 %v3730_v63, %v1197_v29  ;;  %v989_v27 = vrot.slane %v983_v60, 1  ;;  %v1000_v41 = vmul.f32 %v2896_v49, %v890_v55 }
 0x194   : > { %v3732_v24 = vstv %s3717_s30  ;;  %v3733_v16 = vstv %s3719_s28  ;;  %v3734_v59 = vmov %v3718_v3  ;;  %v1115_v32 = vadd.f32 %v3735_v31, %v1109_v26  ;;  %s3782_s30 = sld [smem:[#allocation33_spill]]  ;;  %s3785_s28 = sld [smem:[#allocation26_spill]] }
 0x195   : > { %v3198_v51 = vadd.f32 %v1347_v25, %v3732_v24  ;;  %v3202_v10 = vadd.f32 %v1384_v2, %v3733_v16  ;;  %v1459_v5 = vmul.f32 %v3734_v59, %v1197_v29  ;;  %v3736_v3 = vstv %s3706_s23 }
 0x196   : > { %v1203_v30 = vadd.f32 %v1201_v36, %v3736_v3  ;;  %v3737_v62 = vmov %v3724_v20  ;;  %v3738_v57 = vmov %v3725_v17  ;;  %v3739_v55 = vmov %v3728_v44 }
 0x197   : > { %v1239_v60 = vadd.f32 %v1237_v9, %v3737_v62  ;;  %v3213_v7 = vadd.f32 %v1274_v28, %v3738_v57  ;;  %v3217_v20 = vadd.f32 %v1311_v33, %v3739_v55  ;;  %v3740_v25 = vmov %v3732_v24  ;;  %v3235_v9 = vld [vmem:[#allocation2 + $0x10] sm:$0xff]  ;;  %v1062_v24 = vpop.permute.xlu1 %1061  ;;  %v3749_v57 = vld [vmem:[#allocation35_spill] sm:$0xff] }
 0x198   : > { %v3221_v2 = vadd.f32 %v1348_v21, %v3740_v25  ;;  %v3741_v17 = vmov %v3733_v16  ;;  %v3742_v15 = vstv %s3729_s6  ;;  %v3743_v36 = vstv %s3731_s3 }
 0x199   : > { %v3225_v29 = vadd.f32 %v1385_v52, %v3741_v17  ;;  %v3229_v26 = vadd.f32 %v1421_v35, %v3742_v15  ;;  %v3233_v50 = vadd.f32 %v1458_v11, %v3743_v36  ;;  %v3744_v28 = vmov %v3742_v15  ;;  %v3746_v35 = vld [vmem:[#allocation34_spill] sm:$0xff] }
 0x19a   : > { %v3239_v44 = vadd.f32 %v1422_v4, %v3744_v28  ;;  %v979_v33 = vadd.f32 %v977_v42, %v973_v8  ;;  %v991_v21 = vsel %vm555_vm1, %v989_v27, %v990_v56  ;;  %v1006_v63 = vrot.slane %v1000_v41, 2  ;;  %v1205_v4 = vld [vmem:[#allocation2 + $0x18] sm:$0xff]  ;;  %s1817_s24 = sshll.u32 %s3785_s28, 11  ;;  %s1490_s8 = scalar_lea.sflag [#allocation5], %s3782_s30 }
 0x19b   : > { %v3745_v52 = vmov %v3743_v36  ;;  %v1132_v59 = vadd.f32 %v3746_v35, %v1115_v32  ;;  %v3747_v11 = vstv %s2868_s2  ;;  %v892_v3 = vsel %vm535_vm4, %v886_v14, 0.0  ;;  %v3750_v14 = vld [vmem:[#allocation60_spill] sm:$0xff] }
 0x19c   : > { %v3246_v16 = vadd.f32 %v1459_v5, %v3745_v52  ;;  %v1153_v31 = vmul.f32 %v3747_v11, %v3150_v43  ;;  %v3748_v8 = vstv %s2822_s10  ;;  %v996_v62 = vadd.f32 %v991_v21, %v979_v33  ;;  %v1060_v5 = vpop.permute.xlu0 %1059 }
 0x19d   : > { %v1208_v42 = vmul.f32 %v3748_v8, %v3235_v9  ;;  %v985_v27 = vmul.f32 %v2893_v47, %v892_v3  ;;  %v1002_v41 = vmul.f32 %v2896_v49, %v892_v3  ;;  %v1008_v32 = vsel %vm573_vm2, %v1006_v63, %v1007_v61  ;;  %v3753_v63 = vld [vmem:[#allocation59_spill] sm:$0xff] }
 0x19e   : > { %v1149_v55 = vadd.f32 %v3749_v57, %v1132_v59  ;;  %v1159_v25 = vmul.f32 %v3750_v14, %v3150_v43  ;;  %v1068_v17 = vsel %vm535_vm4, %v1062_v24, 0.0  ;;  %v1013_v15 = vadd.f32 %v1008_v32, %v996_v62  ;;  %v3756_v32 = vld [vmem:[#allocation36_spill] sm:$0xff] }
 0x19f   : > { %v992_v36 = vrot.slane %v985_v27, 1  ;;  %v1009_v47 = vrot.slane %v1002_v41, 2  ;;  %v1161_v28 = vmul.f32 %v3750_v14, %v1068_v17  ;;  %v3751_v49 = vmov %v3748_v8 }
 0x1a0   : > { %v1209_v33 = vmul.f32 %v3751_v49, %v1205_v4  ;;  %v3752_v21 = vstv %s2824_s7  ;;  %v1116_v35 = vadd.f32 %v3753_v63, %v3138_v13  ;;  %v1067_v59 = vsel %vm535_vm4, %v1060_v5, 0.0  ;;  %1016 = vst.msk [vmem:[#allocation2 + $0x20] sm:$0xff] %vm663_vm5, %v1013_v15  ;;  %s3775_s7 = sld [smem:[#allocation57_spill]] }
 0x1a1   : > { %v1244_v52 = vmul.f32 %v3752_v21, %v3235_v9  ;;  %v3754_v11 = vmov %v3752_v21  ;;  %v3755_v24 = vstv %s2836_s9  ;;  %v993_v62 = vsel %vm555_vm1, %v990_v56, %v992_v36 }
 0x1a2   : > { %v1245_v3 = vmul.f32 %v3754_v11, %v1205_v4  ;;  %v1281_v8 = vmul.f32 %v3755_v24, %v3235_v9  ;;  %v1168_v27 = vrot.slane %v1161_v28, 1  ;;  %v997_v41 = vadd.f32 %v993_v62, %v3140_v1  ;;  %v3760_v28 = vld [vmem:[#allocation37_spill] sm:$0xff] }
 0x1a3   : > { %v1133_v57 = vadd.f32 %v3756_v32, %v1116_v35  ;;  %v3757_v13 = vstv %s2868_s2  ;;  %v1160_v5 = vmul.f32 %v3750_v14, %v1067_v59  ;;  %v3758_v21 = vmov %v3755_v24  ;;  %s3791_s2 = sld [smem:[#allocation31_spill]] }
 0x1a4   : > { %v1154_v49 = vmul.f32 %v3757_v13, %v1067_v59  ;;  %v1282_v63 = vmul.f32 %v3758_v21, %v1205_v4  ;;  %v1165_v11 = vrot.slane %v1159_v25, 1  ;;  %v1010_v15 = vsel %vm573_vm2, %v1007_v61, %v1009_v47 }
 0x1a5   : > { %v1178_v56 = vmul.f32 %v3759_v40, %v1068_v17  ;;  %v1014_v36 = vadd.f32 %v1010_v15, %v997_v41  ;;  %v1150_v1 = vadd.f32 %v3760_v28, %v1133_v57  ;;  %v1166_v35 = vrot.slane %v1160_v5, 1 }
 0x1a6   : > { %v1177_v24 = vmul.f32 %v3759_v40, %v1067_v59  ;;  %v1210_v14 = vadd.f32 %v1208_v42, %v3161_v0  ;;  %v3297_v62 = vadd.f32 %v1209_v33, %v1203_v30  ;;  %v1246_v18 = vadd.f32 %v1244_v52, %v3179_v6 }
 0x1a7   : > { %v3761_v61 = vstv %s2838_s13  ;;  %v1176_v17 = vmul.f32 %v3759_v40, %v3150_v43  ;;  %1017 = vst.msk [vmem:[#allocation2 + $0x28] sm:$0xff] %vm663_vm5, %v1014_v36  ;;  %v1156_v47 = vadd.f32 %v1154_v49, %v1150_v1  ;;  %v1167_v59 = vsel %vm555_vm1, %v1165_v11, %v1166_v35  ;;  %s1705_s13 = sshll.u32 %s3782_s30, 7 }
 0x1a8   : > { %v1318_v25 = vmul.f32 %v3761_v61, %v3235_v9  ;;  %v1169_v0 = vsel %vm555_vm1, %v1166_v35, %v1168_v27  ;;  %v1247_v30 = vadd.f32 %v1245_v3, %v1239_v60  ;;  %v3763_v42 = vmov %v3761_v61  ;;  %s3397_s10 = scalar_lea.vmem [#allocation16], %s1705_s13 }
 0x1a9   : > { %v1319_v6 = vmul.f32 %v3763_v42, %v1205_v4  ;;  %v3764_v33 = vstv %s2848_s12  ;;  %v1155_v41 = vadd.f32 %v1153_v31, %v1149_v55  ;;  %v3766_v43 = vstv %s2850_s20  ;;  %s1505_s11 = sshll.u32 %s3397_s10, 4  ;;  %p3792_p6 = scmp.ne.s32.totalorder %s3791_s2, 0  ;;  %s3437_s11 = int_to_ptr.vmem [resolvable:$true] %s1505_s11 }
 0x1aa   : > { %v1355_v52 = vmul.f32 %v3764_v33, %v3235_v9  ;;  %v3765_v32 = vmov %v3764_v33  ;;  %v1392_v13 = vmul.f32 %v3766_v43, %v3235_v9  ;;  %v1185_v5 = vrot.slane %v1178_v56, 2  ;;  %s2090_s21 = scalar_lea.vmem %s3437_s11, 2048  ;;  %p2097_p10 = scmp.lt.s32.totalorder %s3437_s11, %s2095_s1 }
 0x1ab   : > { %v1356_v57 = vmul.f32 %v3765_v32, %v1205_v4  ;;  %v1183_v49 = vrot.slane %v1177_v24, 2  ;;  %v3767_v21 = vmov %v3766_v43  ;;  %v3768_v11 = vstv %s2860_s22  ;;  %s3790_s22 = sld [smem:[#allocation69_spill]]  ;;  %p2091_p7 = scmp.ne.s32.totalorder %s3437_s11, %s2090_s21 }
 0x1ac   : > { %v1393_v15 = vmul.f32 %v3767_v21, %v1205_v4  ;;  %v1429_v40 = vmul.f32 %v3768_v11, %v3235_v9  ;;  %v1172_v27 = vadd.f32 %v1167_v59, %v1155_v41  ;;  %v1173_v60 = vadd.f32 %v1169_v0, %v1156_v47  ;;  %p2098_p3 = scmp.lt.s32.totalorder %s2096_s14, %s2090_s21 }
 0x1ad   : > { %v3769_v3 = vmov %v3768_v11  ;;  %v3770_v28 = vstv %s3762_s0  ;;  %v1182_v35 = vrot.slane %v1176_v17, 2  ;;  %v1283_v61 = vadd.f32 %v1281_v8, %v3183_v12  ;;  %p2092_p8 = pnand %p2091_p7, %p3792_p6 }
 0x1ae   : > { %v1430_v36 = vmul.f32 %v3769_v3, %v1205_v4  ;;  %v1466_v1 = vmul.f32 %v3770_v28, %v3235_v9  ;;  %v3771_v31 = vmov %v3770_v28  ;;  %v1284_v56 = vadd.f32 %v1282_v63, %v3213_v7  ;;  %v1212_v9 = vld [vmem:[#allocation2 + $0x20] sm:$0xff]  ;;  %p2099_p5 = por %p2098_p3, %p2097_p10 }
 0x1af   : > { %v1467_v55 = vmul.f32 %v3771_v31, %v1205_v4  ;;  %v1320_v24 = vadd.f32 %v1318_v25, %v3191_v23  ;;  %v1321_v42 = vadd.f32 %v1319_v6, %v3217_v20  ;;  %v1357_v47 = vadd.f32 %v1355_v52, %v3198_v51  ;;  %p2093_p11 = pneg %p2092_p8 }
 0x1b0   : > { %v1358_v59 = vadd.f32 %v1356_v57, %v3221_v2  ;;  %v1184_v4 = vsel %vm573_vm2, %v1182_v35, %v1183_v49  ;;  %v1186_v17 = vsel %vm573_vm2, %v1183_v49, %v1185_v5  ;;  %v1394_v12 = vadd.f32 %v1392_v13, %v3202_v10  ;;  %v1213_v10 = vld [vmem:[#allocation2 + $0x28] sm:$0xff] }
 0x1b1   : > { %v1395_v23 = vadd.f32 %v1393_v15, %v3225_v29  ;;  %v1189_v7 = vadd.f32 %v1184_v4, %v1172_v27  ;;  %v1190_v20 = vadd.f32 %v1186_v17, %v1173_v60  ;;  %v1431_v51 = vadd.f32 %v1429_v40, %v3229_v26  ;;  %s3435_s29 = scalar_lea.hbm %s3790_s22, %s1817_s24  ;;  %p2100_p0 = pnand %p2099_p5, %p2093_p11 }
 0x1b2   : > { %v1432_v2 = vadd.f32 %v1430_v36, %v3239_v44  ;;  %v1468_v8 = vadd.f32 %v1466_v1, %v3233_v50  ;;  %v1469_v63 = vadd.f32 %v1467_v55, %v3246_v16  ;;  %v3776_v25 = vstv %s3772_s5 }
 0x1b3   : > { %v1216_v29 = vmul.f32 %v3776_v25, %v1212_v9  ;;  %v3777_v0 = vstv %s3773_s25  ;;  %v3778_v33 = vstv %s3774_s27  ;;  %v3779_v52 = vstv %s3775_s7  ;;  %1192 = vst.msk [vmem:[#allocation2 + $0x30] sm:$0xff] %vm663_vm5, %v1189_v7  ;;  %1193 = vst.msk [vmem:[#allocation2 + $0x38] sm:$0xff] %vm663_vm5, %v1190_v20 }
 0x1b4   : > { %v1252_v6 = vmul.f32 %v3777_v0, %v1212_v9  ;;  %v1289_v26 = vmul.f32 %v3778_v33, %v1212_v9  ;;  %v1326_v41 = vmul.f32 %v3779_v52, %v1212_v9  ;;  %v1363_v50 = vmul.f32 %v1362_v54, %v1212_v9 }
 0x1b5   : > { %v1400_v44 = vmul.f32 %v1399_v22, %v1212_v9  ;;  %v1437_v16 = vmul.f32 %v1436_v46, %v1212_v9  ;;  %v1474_v32 = vmul.f32 %v1473_v39, %v1212_v9  ;;  %v3780_v57 = vmov %v3776_v25 }
 0x1b6   : > { %v1217_v43 = vmul.f32 %v3780_v57, %v1213_v10  ;;  %v3781_v13 = vmov %v3777_v0  ;;  %v3783_v49 = vmov %v3778_v33  ;;  %v3784_v15 = vmov %v3779_v52 }
 0x1b7   : > { %v1253_v5 = vmul.f32 %v3781_v13, %v1213_v10  ;;  %v1290_v21 = vmul.f32 %v3783_v49, %v1213_v10  ;;  %v1327_v11 = vmul.f32 %v3784_v15, %v1213_v10  ;;  %v1364_v40 = vmul.f32 %v1362_v54, %v1213_v10 }
 0x1b8   : > { %v1401_v27 = vmul.f32 %v1399_v22, %v1213_v10  ;;  %v1438_v60 = vmul.f32 %v1436_v46, %v1213_v10  ;;  %v1475_v3 = vmul.f32 %v1473_v39, %v1213_v10  ;;  %v1218_v36 = vadd.f32 %v1216_v29, %v1210_v14 }
 0x1b9   : > { %v1254_v28 = vadd.f32 %v1252_v6, %v1246_v18  ;;  %v1291_v1 = vadd.f32 %v1289_v26, %v1283_v61  ;;  %v1328_v31 = vadd.f32 %v1326_v41, %v1320_v24  ;;  %v1365_v55 = vadd.f32 %v1363_v50, %v1357_v47 }
 0x1ba   : > { %v1402_v35 = vadd.f32 %v1400_v44, %v1394_v12  ;;  %v1439_v9 = vadd.f32 %v1437_v16, %v1431_v51  ;;  %v1476_v4 = vadd.f32 %v1474_v32, %v1468_v8  ;;  %v1219_v54 = vadd.f32 %v1217_v43, %v3297_v62  ;;  %v1220_v47 = vld [vmem:[#allocation2 + $0x30] sm:$0xff]  ;;  %v1221_v17 = vld [vmem:[#allocation2 + $0x38] sm:$0xff] }
 0x1bb   : > { %v1255_v22 = vadd.f32 %v1253_v5, %v1247_v30  ;;  %v1292_v46 = vadd.f32 %v1290_v21, %v1284_v56  ;;  %v1329_v39 = vadd.f32 %v1327_v11, %v1321_v42  ;;  %v1366_v14 = vadd.f32 %v1364_v40, %v1358_v59 }
 0x1bc   : > { %v1403_v18 = vadd.f32 %v1401_v27, %v1395_v23  ;;  %v1440_v61 = vadd.f32 %v1438_v60, %v1432_v2  ;;  %v1477_v24 = vadd.f32 %v1475_v3, %v1469_v63  ;;  %v1224_v12 = vmul.f32 %v1223_v37, %v1220_v47 }
 0x1bd   : > { %v1225_v7 = vmul.f32 %v1223_v37, %v1221_v17  ;;  %v1260_v20 = vmul.f32 %v1259_v58, %v1220_v47  ;;  %v1261_v62 = vmul.f32 %v1259_v58, %v1221_v17  ;;  %v1297_v30 = vmul.f32 %v1296_v19, %v1220_v47 }
 0x1be   : > { %v1298_v56 = vmul.f32 %v1296_v19, %v1221_v17  ;;  %v1334_v42 = vmul.f32 %v1333_v38, %v1220_v47  ;;  %v1335_v59 = vmul.f32 %v1333_v38, %v1221_v17  ;;  %v1226_v23 = vadd.f32 %v1224_v12, %v1218_v36 }
 0x1bf   : > { %v1227_v51 = vadd.f32 %v1225_v7, %v1219_v54  ;;  %v1262_v2 = vadd.f32 %v1260_v20, %v1254_v28  ;;  %v1263_v37 = vadd.f32 %v1261_v62, %v1255_v22  ;;  %v1299_v8 = vadd.f32 %v1297_v30, %v1291_v1 }
 0x1c0   : > { %v1300_v63 = vadd.f32 %v1298_v56, %v1292_v46  ;;  %v1336_v10 = vadd.f32 %v1334_v42, %v1328_v31  ;;  %v1337_v58 = vadd.f32 %v1335_v59, %v1329_v39  ;;  %1228 = vst.msk [vmem:[%s3397_s10] sm:$0xff] %vm663_vm5, %v1226_v23  ;;  %v1371_v19 = vmul.f32 %v1370_v34, %v1220_v47 }
 0x1c1   : > { %1229 = vst.msk [vmem:[%s3397_s10 + $0x8] sm:$0xff] %vm663_vm5, %v1227_v51  ;;  %1764 = vst.msk [vmem:[%s3397_s10 + $0x10] sm:$0xff] %vm663_vm5, %v1262_v2  ;;  %v1372_v38 = vmul.f32 %v1370_v34, %v1221_v17  ;;  %v1408_v25 = vmul.f32 %v1407_v45, %v1220_v47  ;;  %v1409_v29 = vmul.f32 %v1407_v45, %v1221_v17 }
 0x1c2   : > { %1765 = vst.msk [vmem:[%s3397_s10 + $0x18] sm:$0xff] %vm663_vm5, %v1263_v37  ;;  %1771 = vst.msk [vmem:[%s3397_s10 + $0x20] sm:$0xff] %vm663_vm5, %v1299_v8  ;;  %v1445_v0 = vmul.f32 %v1444_v53, %v1220_v47  ;;  %v1446_v6 = vmul.f32 %v1444_v53, %v1221_v17  ;;  %v1482_v34 = vmul.f32 %v1481_v48, %v1220_v47 }
 0x1c3   : > { %1772 = vst.msk [vmem:[%s3397_s10 + $0x28] sm:$0xff] %vm663_vm5, %v1300_v63  ;;  %1778 = vst.msk [vmem:[%s3397_s10 + $0x30] sm:$0xff] %vm663_vm5, %v1336_v10  ;;  %v1483_v45 = vmul.f32 %v1481_v48, %v1221_v17  ;;  %v1373_v33 = vadd.f32 %v1371_v19, %v1365_v55  ;;  %v1374_v26 = vadd.f32 %v1372_v38, %v1366_v14 }
 0x1c4   : > { %1779 = vst.msk [vmem:[%s3397_s10 + $0x38] sm:$0xff] %vm663_vm5, %v1337_v58  ;;  %v1410_v52 = vadd.f32 %v1408_v25, %v1402_v35  ;;  %v1411_v41 = vadd.f32 %v1409_v29, %v1403_v18  ;;  %v1447_v53 = vadd.f32 %v1445_v0, %v1439_v9  ;;  %v1448_v48 = vadd.f32 %v1446_v6, %v1440_v61 }
 0x1c5   : > { %v1484_v50 = vadd.f32 %v1482_v34, %v1476_v4  ;;  %v1485_v44 = vadd.f32 %v1483_v45, %v1477_v24  ;;  %1785 = vst.msk [vmem:[%s3397_s10 + $0x40] sm:$0xff] %vm663_vm5, %v1373_v33  ;;  %1786 = vst.msk [vmem:[%s3397_s10 + $0x48] sm:$0xff] %vm663_vm5, %v1374_v26 }
 0x1c6   : > { %1792 = vst.msk [vmem:[%s3397_s10 + $0x50] sm:$0xff] %vm663_vm5, %v1410_v52  ;;  %1793 = vst.msk [vmem:[%s3397_s10 + $0x58] sm:$0xff] %vm663_vm5, %v1411_v41 }
 0x1c7   : > { %1799 = vst.msk [vmem:[%s3397_s10 + $0x60] sm:$0xff] %vm663_vm5, %v1447_v53  ;;  %1800 = vst.msk [vmem:[%s3397_s10 + $0x68] sm:$0xff] %vm663_vm5, %v1448_v48 }
 0x1c8   : > { %1806 = vst.msk [vmem:[%s3397_s10 + $0x70] sm:$0xff] %vm663_vm5, %v1484_v50  ;;  %1807 = vst.msk [vmem:[%s3397_s10 + $0x78] sm:$0xff] %vm663_vm5, %v1485_v44 }
 0x1c9   : > { %2103 = shalt.err (!%p2100_p0)
}
 0x1ca   : > { %s2104_s15 = scalar_lea.hbm %s3435_s29, 2048  ;;  %s2108_s23 = scalar_lea.hbm %s3790_s22, 4096 }
 0x1cb   : > { %p2105_p1 = scmp.ne.s32.totalorder %s3435_s29, %s2104_s15  ;;  %p2109_p12 = scmp.lt.u32.totalorder %s3435_s29, %s3790_s22 }
 0x1cc   : > { %p2110_p13 = scmp.lt.u32.totalorder %s2108_s23, %s2104_s15  ;;  %p2112_p7 = scmp.lt.u32.totalorder %s2104_s15, %s3435_s29 }
 0x1cd   : > { %p2106_p9 = pnand %p2105_p1, %p3792_p6 }
 0x1ce   : > { %p2111_p4 = por %p2110_p13, %p2109_p12 }
 0x1cf   : > { %p2107_p2 = pneg %p2106_p9 }
 0x1d0   : > { %p2113_p8 = por %p2112_p7, %p2111_p4 }
 0x1d2   : > { %p2114_p11 = pnand %p2113_p8, %p2107_p2 }
 0x1d4   : > { %2117 = shalt.err (!%p2114_p11)
}
 0x1d5   : > { %s2204_s0 = smov 128   ;;  %s2205_s5 = smov 8  }
 0x1d6   : > { %1841 = dma.vmem_to_hbm [thread:$0]  (%p3792_p6), %s3437_s11, 2048, %s3435_s29, %s1490_s8, %s2204_s0, %s2204_s0, %s2205_s5  }
 0x1d7 PF: > { %s3793_s25 = sld [smem:[#allocation23_spill]]  ;;  %s3794_s27 = sld [smem:[#allocation29_spill]] }
 0x1d8   : > { %s3795_s7 = sld [smem:[#allocation28_spill]] }
 0x1dd   : > { %s1520_s13 = sand.u32 1, %s3793_s25   ;;  %p3796_p10 = scmp.ne.s32.totalorder %s3794_s27, 0 }
 0x1de   : > { %p3797_p3 = scmp.ge.s32.totalorder %s3795_s7, 2  ;;  %s1521_s28 = scalar_lea.sflag [#allocation5], %s1520_s13 }
 0x1e0   : > { %p1867_p5 = pnand %p3797_p3, %p3796_p10 }
 0x1e2   : > { %2163 = dma.done.wait (!%p1867_p5), %s1521_s28, 2048  }
 0x1e3   : > { %2165 = vsyncadd (!%p1867_p5), %s1521_s28, 4294965248  ;;  %s29_s29 = sadd.s32 1, %s3795_s7   ;;  %s3798_s24 = sld [smem:[#allocation24_spill]] }
 0x1e4   : > { %p26_p0 = scmp.ge.s32.totalorder %s29_s29, 4   ;;  %s3799_s25 = sld [smem:[#allocation25_spill]] }
 0x1e5   : > { %s3800_s26 = sld [smem:[#allocation32_spill]]  ;;  %s3801_s27 = sld [smem:[#allocation27_spill]] }
 0x1e6   : > { %s3802_s28 = sld [smem:[#allocation30_spill]]  ;;  %28 = sbr.rel (!%p26_p0) target bundleno = 20 (0x14), region = 153 }
 0x1ed   :  { %1526 = vsyncpa [#allocation4], 1 }
 0x1ee   :  { %1528 = vsyncpa [#allocation4 + $0x1], 1 }
 0x1ef   :  { %1529 = vsyncpa [#allocation8], 1 }
 0x1f0   :  { %1531 = vsyncpa [#allocation8 + $0x1], 1 }
 0x1f1   :  { %1532 = vsyncpa [#allocation5], 1 }
 0x1f2   :  { %1534 = vsyncpa [#allocation5 + $0x1], 1 }
 0x1f3   :  { %1535 = vsyncpa [#allocation6], 1 }
 0x1f4   :  { %1537 = vsyncpa [#allocation6 + $0x1], 1 }
 0x1f5   :  { %1538 = vsyncpa [#allocation12], 1 }
 0x1f6   :  { %1539 = vsyncpa [#allocation15], 1 }

</bundles_post_ra>
